<compile_context>
chip_gen: v7x
topology: tpu7x:2x2x1
jax: 0.10.0
libtpu: 0.0.40
codegen_flags: <defaults>
</compile_context>

<pallas_src>
import functools
import math

import jax
import jax.numpy as jnp
from jax.experimental import pallas as pl
from jax.experimental.pallas import tpu as pltpu

DTYPE = jnp.bfloat16                 # model dtype: bf16 operands feed the MXU directly


def _round_up(x, m):
    return (x + m - 1) // m * m


def _pick_tile(dim, target):
    """Return (tile, padded_dim). Full-dim blocks are always legal; otherwise use an aligned
    target tile (targets are multiples of 8 and 128)."""
    if dim <= target:
        return dim, dim
    return target, _round_up(dim, target)


# ------------------------- generation-aware sizing ---------------------------

def _detect_vmem_capacity():
    try:
        return int(pltpu.get_tpu_info().vmem_capacity_bytes)
    except Exception:
        return 64 * 1024 * 1024      # conservative (v7x-sized) fallback


_VMEM_CAP = _detect_vmem_capacity()
_VMEM_LIMIT = min(_VMEM_CAP * 3 // 4, 100 * 1024 * 1024)
_BIG_VMEM = _VMEM_CAP >= 96 * 1024 * 1024        # v5e/v6e (128 MiB) vs v7x (64 MiB)

_LN_ROWS = 512 if _BIG_VMEM else 256             # LayerNorm row tile
_MM_TM = 512 if _BIG_VMEM else 256               # GEMM M tile
_MM_TN = 256
_MM_TK = 512
_MOE_TM = 512 if _BIG_VMEM else 256              # MoE token tile
_MOE_TF = 512                                    # MoE F tile
_ATTN_TILE = 256                                 # attention q/kv tile (tq == tk)


# --------------------------- tiled matmul + bias -----------------------------

def _matmul_bias_kernel(x_ref, w_ref, b_ref, o_ref, acc_ref):
    @pl.when(pl.program_id(2) == 0)
    def _():
        acc_ref[...] = jnp.zeros_like(acc_ref)

    acc_ref[...] += jnp.dot(x_ref[...], w_ref[...],
                            preferred_element_type=jnp.float32)

    @pl.when(pl.program_id(2) == pl.num_programs(2) - 1)
    def _():
        o_ref[...] = (acc_ref[...]
                      + b_ref[...].astype(jnp.float32)).astype(o_ref.dtype)


def matmul_bias(x, w, b=None):
    """x:(M,K) @ w:(K,N) + b -> (M,N), tiled with an f32 accumulator."""
    M, K = x.shape
    _, N = w.shape
    tm, Mp = _pick_tile(M, _MM_TM)
    tn, Np = _pick_tile(N, _MM_TN)
    tk, Kp = _pick_tile(K, _MM_TK)
    # pads are guarded -> true no-ops when dims are tile multiples
    xp = x if (Mp == M and Kp == K) else jnp.pad(x, ((0, Mp - M), (0, Kp - K)))
    wp = w if (Kp == K and Np == N) else jnp.pad(w, ((0, Kp - K), (0, Np - N)))
    if b is None:
        bp = jnp.zeros((1, Np), x.dtype)
    else:
        bp = (b if Np == N else jnp.pad(b, (0, Np - N))).reshape(1, Np).astype(x.dtype)

    out = pl.pallas_call(
        _matmul_bias_kernel,
        out_shape=jax.ShapeDtypeStruct((Mp, Np), x.dtype),
        grid=(Mp // tm, Np // tn, Kp // tk),
        in_specs=[pl.BlockSpec((tm, tk), lambda i, j, k: (i, k)),
                  pl.BlockSpec((tk, tn), lambda i, j, k: (k, j)),
                  pl.BlockSpec((1, tn), lambda i, j, k: (0, j))],
        out_specs=pl.BlockSpec((tm, tn), lambda i, j, k: (i, j)),
        scratch_shapes=[pltpu.VMEM((tm, tn), jnp.float32)],
        compiler_params=pltpu.CompilerParams(
            dimension_semantics=("parallel", "parallel", "arbitrary"),
            vmem_limit_bytes=_VMEM_LIMIT),
    )(xp, wp, bp)
    if Mp == M and Np == N:
        return out
    return out[:M, :N]


# ------------------------------ LayerNorm family -----------------------------

def _ln_math(x, w_ref, b_ref, eps):
    mean = jnp.mean(x, axis=-1, keepdims=True)
    xc = x - mean
    var = jnp.mean(xc * xc, axis=-1, keepdims=True)
    return (xc * jax.lax.rsqrt(var + eps) * w_ref[...].astype(jnp.float32)
            + b_ref[...].astype(jnp.float32))


def _layernorm_kernel(x_ref, w_ref, b_ref, o_ref, *, eps):
    x = x_ref[...].astype(jnp.float32)
    o_ref[...] = _ln_math(x, w_ref, b_ref, eps).astype(o_ref.dtype)


def _add_layernorm_kernel(x_ref, r_ref, w_ref, b_ref, o_ref, res_ref, *, eps):
    x = x_ref[...].astype(jnp.float32) + r_ref[...].astype(jnp.float32)
    o_ref[...] = _ln_math(x, w_ref, b_ref, eps).astype(o_ref.dtype)
    res_ref[...] = x.astype(res_ref.dtype)


def _add_layernorm_gate_kernel(x_ref, r_ref, w_ref, b_ref, gw_ref,
                               o_ref, res_ref, logit_ref, *, eps):
    x = x_ref[...].astype(jnp.float32) + r_ref[...].astype(jnp.float32)
    y = _ln_math(x, w_ref, b_ref, eps)
    o_ref[...] = y.astype(o_ref.dtype)
    res_ref[...] = x.astype(res_ref.dtype)
    # fused router gate (gate weight pre-padded to 128 lanes at prep time)
    logit_ref[...] = jnp.dot(y.astype(gw_ref.dtype), gw_ref[...],
                             preferred_element_type=jnp.float32)


def _ln_prep(T):
    return _pick_tile(_round_up(T, 8), _LN_ROWS)


def layernorm(x, w, b, eps):
    T, D = x.shape
    tm, Tp = _ln_prep(T)
    xp = x if Tp == T else jnp.pad(x, ((0, Tp - T), (0, 0)))
    out = pl.pallas_call(
        functools.partial(_layernorm_kernel, eps=eps),
        out_shape=jax.ShapeDtypeStruct((Tp, D), x.dtype),
        grid=(Tp // tm,),
        in_specs=[pl.BlockSpec((tm, D), lambda i: (i, 0)),
                  pl.BlockSpec((1, D), lambda i: (0, 0)),
                  pl.BlockSpec((1, D), lambda i: (0, 0))],
        out_specs=pl.BlockSpec((tm, D), lambda i: (i, 0)),
        compiler_params=pltpu.CompilerParams(
            dimension_semantics=("parallel",),
            vmem_limit_bytes=_VMEM_LIMIT),
    )(xp, w.reshape(1, D), b.reshape(1, D))
    return out if Tp == T else out[:T]


def add_layernorm(x, residual, w, b, eps):
    T, D = x.shape
    tm, Tp = _ln_prep(T)
    xp = x if Tp == T else jnp.pad(x, ((0, Tp - T), (0, 0)))
    rp = residual if Tp == T else jnp.pad(residual, ((0, Tp - T), (0, 0)))
    outs = pl.pallas_call(
        functools.partial(_add_layernorm_kernel, eps=eps),
        out_shape=(jax.ShapeDtypeStruct((Tp, D), x.dtype),
                   jax.ShapeDtypeStruct((Tp, D), x.dtype)),
        grid=(Tp // tm,),
        in_specs=[pl.BlockSpec((tm, D), lambda i: (i, 0)),
                  pl.BlockSpec((tm, D), lambda i: (i, 0)),
                  pl.BlockSpec((1, D), lambda i: (0, 0)),
                  pl.BlockSpec((1, D), lambda i: (0, 0))],
        out_specs=(pl.BlockSpec((tm, D), lambda i: (i, 0)),
                   pl.BlockSpec((tm, D), lambda i: (i, 0))),
        compiler_params=pltpu.CompilerParams(
            dimension_semantics=("parallel",),
            vmem_limit_bytes=_VMEM_LIMIT),
    )(xp, rp, w.reshape(1, D), b.reshape(1, D))
    if Tp == T:
        return outs[0], outs[1]
    return outs[0][:T], outs[1][:T]


def add_layernorm_gate(x, residual, w, b, gate_wp, eps):
    """Fused residual add + LayerNorm + router-gate logits (gate_wp pre-padded (D,Ep))."""
    T, D = x.shape
    Ep = gate_wp.shape[1]
    tm, Tp = _ln_prep(T)
    xp = x if Tp == T else jnp.pad(x, ((0, Tp - T), (0, 0)))
    rp = residual if Tp == T else jnp.pad(residual, ((0, Tp - T), (0, 0)))
    outs = pl.pallas_call(
        functools.partial(_add_layernorm_gate_kernel, eps=eps),
        out_shape=(jax.ShapeDtypeStruct((Tp, D), x.dtype),
                   jax.ShapeDtypeStruct((Tp, D), x.dtype),
                   jax.ShapeDtypeStruct((Tp, Ep), jnp.float32)),
        grid=(Tp // tm,),
        in_specs=[pl.BlockSpec((tm, D), lambda i: (i, 0)),
                  pl.BlockSpec((tm, D), lambda i: (i, 0)),
                  pl.BlockSpec((1, D), lambda i: (0, 0)),
                  pl.BlockSpec((1, D), lambda i: (0, 0)),
                  pl.BlockSpec((D, Ep), lambda i: (0, 0))],
        out_specs=(pl.BlockSpec((tm, D), lambda i: (i, 0)),
                   pl.BlockSpec((tm, D), lambda i: (i, 0)),
                   pl.BlockSpec((tm, Ep), lambda i: (i, 0))),
        compiler_params=pltpu.CompilerParams(
            dimension_semantics=("parallel",),
            vmem_limit_bytes=_VMEM_LIMIT),
    )(xp, rp, w.reshape(1, D), b.reshape(1, D), gate_wp)
    normed, new_res, logits = outs
    if Tp != T:
        normed, new_res, logits = normed[:T], new_res[:T], logits[:T]
    return normed, new_res, logits


# --------------------- flash causal attention (GQA, tri-grid) ----------------

def _flash_attn_kernel(qt_ref, kt_ref, q_ref, k_ref, v_ref, o_ref,
                       m_ref, l_ref, acc_ref):
    s_idx = pl.program_id(2)
    qi = qt_ref[s_idx]
    ki = kt_ref[s_idx]
    group, tq, dh = q_ref.shape[2], q_ref.shape[3], q_ref.shape[4]
    tk = k_ref.shape[2]

    @pl.when(ki == 0)
    def _():
        m_ref[...] = jnp.full_like(m_ref, -1e30)
        l_ref[...] = jnp.zeros_like(l_ref)
        acc_ref[...] = jnp.zeros_like(acc_ref)

    # q is pre-scaled (scale folded into rotary); all query heads sharing this KV head
    # are stacked into the M dimension of the MXU.
    q = q_ref[0, 0].reshape(group * tq, dh)            # (G*tq, Dh) bf16
    k = k_ref[0, 0]                                    # (tk, Dh)  bf16
    s = jax.lax.dot_general(q, k, (((1,), (1,)), ((), ())),
                            preferred_element_type=jnp.float32)

    def update(scores):
        m_prev = m_ref[...]
        m_new = jnp.maximum(m_prev, jnp.max(scores, axis=-1, keepdims=True))
        alpha = jnp.exp(m_prev - m_new)
        p = jnp.exp(scores - m_new)
        l_ref[...] = alpha * l_ref[...] + jnp.sum(p, axis=-1, keepdims=True)
        acc_ref[...] = alpha * acc_ref[...] + jnp.dot(
            p.astype(v_ref.dtype), v_ref[0, 0],
            preferred_element_type=jnp.float32)
        m_ref[...] = m_new

    is_diag = ki == qi

    @pl.when(is_diag)
    def _():
        # diagonal tile: build the within-tile causal mask (tq == tk) and finalize the q tile
        row = jax.lax.broadcasted_iota(jnp.int32, (group, tq, tk), 1)
        col = jax.lax.broadcasted_iota(jnp.int32, (group, tq, tk), 2)
        masked = jnp.where(col <= row, s.reshape(group, tq, tk),
                           -1e30).reshape(group * tq, tk)
        update(masked)
        # exact reciprocal: runs once per q tile, keeps parity with the reference softmax
        o_ref[0, 0] = (acc_ref[...] / l_ref[...]).reshape(
            group, tq, dh).astype(o_ref.dtype)

    @pl.when(jnp.logical_not(is_diag))
    def _():
        update(s)                                      # strictly-below tiles: no mask work


def flash_attention(q, k, v):
    """q:(B,H,S,Dh) (already scaled), k/v:(B,Hkv,S,Dh) -> (B,H,S,Dh).

    Only lower-triangular (qi,ki) tile pairs are enumerated (scalar-prefetched tables),
    so masked KV tiles are never DMA'd; GQA query heads share each streamed KV tile."""
    B, H, S, Dh = q.shape
    Hkv = k.shape[1]
    group = H // Hkv
    tq, Sp = _pick_tile(_round_up(S, 8), _ATTN_TILE)
    tk = tq
    if Sp != S:
        pad = Sp - S
        q = jnp.pad(q, ((0, 0), (0, 0), (0, pad), (0, 0)))
        k = jnp.pad(k, ((0, 0), (0, 0), (0, pad), (0, 0)))
        v = jnp.pad(v, ((0, 0), (0, 0), (0, pad), (0, 0)))
    nq = Sp // tq

    qi_list, ki_list = [], []
    for qi in range(nq):
        for ki in range(qi + 1):
            qi_list.append(qi)
            ki_list.append(ki)
    qt = jnp.array(qi_list, jnp.int32)
    kt = jnp.array(ki_list, jnp.int32)
    n_tri = len(qi_list)

    q5 = q.reshape(B, Hkv, group, Sp, Dh)              # kv head = query head // group

    out = pl.pallas_call(
        _flash_attn_kernel,
        out_shape=jax.ShapeDtypeStruct((B, Hkv, group, Sp, Dh), q.dtype),
        grid_spec=pltpu.PrefetchScalarGridSpec(
            num_scalar_prefetch=2,
            grid=(B, Hkv, n_tri),
            in_specs=[pl.BlockSpec((1, 1, group, tq, Dh),
                                   lambda b, h, s, qt, kt: (b, h, 0, qt[s], 0)),
                      pl.BlockSpec((1, 1, tk, Dh),
                                   lambda b, h, s, qt, kt: (b, h, kt[s], 0)),
                      pl.BlockSpec((1, 1, tk, Dh),
                                   lambda b, h, s, qt, kt: (b, h, kt[s], 0))],
            out_specs=pl.BlockSpec((1, 1, group, tq, Dh),
                                   lambda b, h, s, qt, kt: (b, h, 0, qt[s], 0)),
            scratch_shapes=[pltpu.VMEM((group * tq, 1), jnp.float32),
                            pltpu.VMEM((group * tq, 1), jnp.float32),
                            pltpu.VMEM((group * tq, Dh), jnp.float32)]),
        compiler_params=pltpu.CompilerParams(
            dimension_semantics=("parallel", "parallel", "arbitrary"),
            vmem_limit_bytes=_VMEM_LIMIT),
    )(qt, kt, q5, k, v)

    out = out.reshape(B, H, Sp, Dh)
    return out if Sp == S else out[:, :, :S, :]


# -------------------- token-grouped fused MoE (scalar prefetch) --------------

def _moe_tile_kernel(te_ref, x_ref, w13_ref, w2_ref, wrow_ref, o_ref, acc_ref):
    del te_ref  # used only by the index_maps
    f = pl.program_id(1)

    @pl.when(f == 0)
    def _():
        acc_ref[...] = jnp.zeros_like(acc_ref)

    x = x_ref[...]                                     # (tm, D) bf16
    # one fused weight stream: w13_ref block is (1, 2, D, tf) = [w1 tile, w3 tile]
    g = jnp.dot(x, w13_ref[0, 0], preferred_element_type=jnp.float32)
    u = jnp.dot(x, w13_ref[0, 1], preferred_element_type=jnp.float32)
    h = (g * jax.nn.sigmoid(g)) * u                    # SiLU gate, f32
    acc_ref[...] += jnp.dot(h.astype(w2_ref.dtype), w2_ref[0],
                            preferred_element_type=jnp.float32)

    @pl.when(f == pl.num_programs(1) - 1)
    def _():
        # fold the top-k routing weight in-kernel and emit bf16
        o_ref[...] = (acc_ref[...] * wrow_ref[...]).astype(o_ref.dtype)


def fused_moe(x, w13, w2, topk_w, topk_ids, num_experts):
    """Token-grouped MoE: only the experts a token selected are evaluated.

    x:(T,D) bf16, w13:(E,2,D,Fp) (prepared), w2:(E,Fp,D), topk_w/topk_ids:(T,K)."""
    T, D = x.shape
    E = num_experts
    Fp = w2.shape[1]
    K = topk_ids.shape[1]
    TK = T * K
    tm = min(_MOE_TM, _round_up(T, 8))                 # rows per expert tile
    tf, _ = _pick_tile(Fp, _MOE_TF)
    nf = Fp // tf

    flat_e = topk_ids.reshape(-1).astype(jnp.int32)
    flat_t = jnp.repeat(jnp.arange(T, dtype=jnp.int32), K)
    flat_w = topk_w.reshape(-1).astype(jnp.float32)

    order = jnp.argsort(flat_e)
    se, st, sw = flat_e[order], flat_t[order], flat_w[order]

    counts = jnp.bincount(flat_e, length=E)
    padded_counts = ((counts + tm - 1) // tm) * tm
    group_start = jnp.concatenate(
        [jnp.zeros((1,), jnp.int32), jnp.cumsum(padded_counts)[:-1].astype(jnp.int32)])
    expert_start = jnp.concatenate(
        [jnp.zeros((1,), jnp.int32), jnp.cumsum(counts)[:-1].astype(jnp.int32)])
    rank = jnp.arange(TK, dtype=jnp.int32) - expert_start[se]
    dest = group_start[se] + rank                       # unique rows in grouped layout

    num_rows = _round_up(TK + E * (tm - 1), tm)         # static upper bound
    num_tiles = num_rows // tm

    token_of_row = jnp.full((num_rows,), T, jnp.int32).at[dest].set(st)
    weight_of_row = jnp.zeros((num_rows,), jnp.float32).at[dest].set(sw)

    tiles_per_expert = padded_counts // tm
    tile_cum = jnp.cumsum(tiles_per_expert)
    tile_expert = jnp.minimum(
        jnp.searchsorted(tile_cum, jnp.arange(num_tiles, dtype=jnp.int32),
                         side='right'),
        E - 1).astype(jnp.int32)

    # gather tokens into the grouped layout (padding rows read the zero row)
    x_pad = jnp.concatenate([x, jnp.zeros((1, D), x.dtype)], axis=0)
    x_grouped = x_pad[token_of_row]                     # (num_rows, D)
    wrow = weight_of_row.reshape(num_rows, 1)

    y = pl.pallas_call(
        _moe_tile_kernel,
        out_shape=jax.ShapeDtypeStruct((num_rows, D), x.dtype),   # bf16 output
        grid_spec=pltpu.PrefetchScalarGridSpec(
            num_scalar_prefetch=1,
            grid=(num_tiles, nf),
            in_specs=[pl.BlockSpec((tm, D), lambda t, f, te: (t, 0)),
                      pl.BlockSpec((1, 2, D, tf), lambda t, f, te: (te[t], 0, 0, f)),
                      pl.BlockSpec((1, tf, D), lambda t, f, te: (te[t], f, 0)),
                      pl.BlockSpec((tm, 1), lambda t, f, te: (t, 0))],
            out_specs=pl.BlockSpec((tm, D), lambda t, f, te: (t, 0)),
            scratch_shapes=[pltpu.VMEM((tm, D), jnp.float32)]),
        compiler_params=pltpu.CompilerParams(
            dimension_semantics=("parallel", "arbitrary"),
            vmem_limit_bytes=_VMEM_LIMIT),
    )(tile_expert, x_grouped, w13, w2, wrow)

    # top-k sum back to tokens (weights already applied in-kernel), bf16
    out = jnp.zeros((T + 1, D), x.dtype).at[token_of_row].add(y)
    return out[:T]


# ------------------------------ JAX glue --------------------------------------

def sparsemixer(scores, jitter_eps):
    """Deterministic part of PhiMoE sparsemixer (top-2 routing); scores f32."""
    E = scores.shape[-1]
    max_val = jnp.max(scores, axis=-1, keepdims=True)
    max_ind = jnp.argmax(scores, axis=-1)[:, None]
    factor = jnp.maximum(jnp.abs(scores), max_val)
    factor = jnp.where(factor == 0, 1.0, factor)        # guard all-zero rows
    mask = (max_val - scores) / factor > 2 * jitter_eps
    masked_gates = jnp.where(mask, -jnp.inf, scores)
    masked_gates = jax.nn.softmax(masked_gates, axis=-1)
    mult1 = jnp.take_along_axis(masked_gates, max_ind, axis=-1)

    onehot1 = jnp.arange(E)[None, :] == max_ind
    masked_scores = jnp.where(onehot1, -jnp.inf, scores)
    max_val2 = jnp.max(masked_scores, axis=-1, keepdims=True)
    max_ind2 = jnp.argmax(masked_scores, axis=-1)[:, None]
    factor2 = jnp.maximum(jnp.abs(scores), max_val2)
    factor2 = jnp.where(factor2 == 0, 1.0, factor2)
    mask2 = (max_val2 - scores) / factor2 > 2 * jitter_eps
    masked_gates2 = jnp.where(mask2, -jnp.inf, masked_scores)
    masked_gates2 = jax.nn.softmax(masked_gates2, axis=-1)
    mult2 = jnp.take_along_axis(masked_gates2, max_ind2, axis=-1)

    multiplier = jnp.concatenate([mult1, mult2], axis=-1)
    selected = jnp.concatenate([max_ind, max_ind2], axis=-1)
    return multiplier, selected


def rope_cos_sin(S, head_dim, base):
    inv_freq = 1.0 / (base ** (jnp.arange(0, head_dim, 2, dtype=jnp.float32)
                               / head_dim))
    pos = jnp.arange(S, dtype=jnp.float32)
    freqs = pos[:, None] * inv_freq[None, :]
    emb = jnp.concatenate([freqs, freqs], axis=-1)
    return jnp.cos(emb), jnp.sin(emb)                   # (S, Dh) f32


def rotate_half(x):
    d = x.shape[-1] // 2
    return jnp.concatenate([-x[..., d:], x[..., :d]], axis=-1)


def apply_rotary(q, k, cos, sin, q_scale=1.0):
    """q:(B,S,H,Dh), k:(B,S,Hkv,Dh); the softmax scale is folded into q (fused by XLA)."""
    c = cos[None, :, None, :]
    s = sin[None, :, None, :]
    qf, kf = q.astype(jnp.float32), k.astype(jnp.float32)
    q_out = (qf * c + rotate_half(qf) * s) * q_scale
    k_out = kf * c + rotate_half(kf) * s
    return q_out.astype(q.dtype), k_out.astype(k.dtype)


CFG = dict(
    vocab_size=64, hidden_size=32, num_attention_heads=4,
    num_key_value_heads=2, intermediate_size=64, num_local_experts=4,
    num_experts_per_tok=2, num_hidden_layers=2, rms_norm_eps=1e-5,
    rope_theta=10000.0, router_jitter_noise=0.01, input_jitter_noise=0.0,
    attention_bias=True, pad_token_id=0,
)


def init_params(key, cfg):
    D = cfg['hidden_size']
    H = cfg['num_attention_heads']
    Hkv = cfg['num_key_value_heads']
    Dh = D // H
    F = cfg['intermediate_size']
    E = cfg['num_local_experts']
    V = cfg['vocab_size']
    L = cfg['num_hidden_layers']

    keys = [key]

    def rnd(shape, scale=0.02):
        keys[0], sub = jax.random.split(keys[0])
        return (scale * jax.random.normal(sub, shape)).astype(DTYPE)

    embed = rnd((V, D))
    embed = embed.at[cfg['pad_token_id']].set(0.0)      # nn.Embedding padding_idx row
    params = dict(embed=embed,
                  norm_w=(jnp.ones((D,), DTYPE) + rnd((D,))).astype(DTYPE),
                  norm_b=rnd((D,)),
                  layers=[])
    for _ in range(L):
        params['layers'].append(dict(
            ln1_w=(jnp.ones((D,), DTYPE) + rnd((D,))).astype(DTYPE), ln1_b=rnd((D,)),
            ln2_w=(jnp.ones((D,), DTYPE) + rnd((D,))).astype(DTYPE), ln2_b=rnd((D,)),
            qkv_w=rnd((D, (H + 2 * Hkv) * Dh)),
            qkv_b=rnd(((H + 2 * Hkv) * Dh,)),
            o_w=rnd((H * Dh, D)), o_b=rnd((D,)),
            gate_w=rnd((D, E)),
            w1=rnd((E, D, F)), w3=rnd((E, D, F)), w2=rnd((E, F, D)),
        ))
    return params


def prepare_params(params, cfg):
    """One-time weight prep (hoisted out of the forward path): pad the router gate to 128
    lanes, pad F to the MoE F tile, and stack w1/w3 into a single fused weight stream."""
    E = cfg['num_local_experts']
    F = cfg['intermediate_size']
    _, Fp = _pick_tile(F, _MOE_TF)
    Ep = _round_up(E, 128)

    prepared = dict(embed=params['embed'], norm_w=params['norm_w'],
                    norm_b=params['norm_b'], layers=[])
    for layer in params['layers']:
        new = dict(layer)
        w1, w3, w2 = new.pop('w1'), new.pop('w3'), new.pop('w2')
        gate_w = new.pop('gate_w')
        if Fp != F:
            w1 = jnp.pad(w1, ((0, 0), (0, 0), (0, Fp - F)))
            w3 = jnp.pad(w3, ((0, 0), (0, 0), (0, Fp - F)))
            w2 = jnp.pad(w2, ((0, 0), (0, Fp - F), (0, 0)))
        new['w13'] = jnp.stack([w1, w3], axis=1)        # (E, 2, D, Fp)
        new['w2'] = w2                                  # (E, Fp, D)
        new['gate_wp'] = (gate_w if Ep == E
                          else jnp.pad(gate_w, ((0, 0), (0, Ep - E))))
        prepared['layers'].append(new)
    return prepared


def phimoe_forward(params, input_ids, cfg):
    B, S = input_ids.shape
    D = cfg['hidden_size']
    H = cfg['num_attention_heads']
    Hkv = cfg['num_key_value_heads']
    Dh = D // H
    E = cfg['num_local_experts']
    T = B * S
    eps = cfg['rms_norm_eps']
    scale = 1.0 / math.sqrt(Dh)

    hidden = jnp.take(params['embed'], input_ids, axis=0)       # (B, S, D)
    cos, sin = rope_cos_sin(S, Dh, cfg['rope_theta'])            # (S, Dh)

    x = hidden.reshape(T, D)
    residual = None
    for layer in params['layers']:
        # --- input layernorm (+ residual add after layer 0) ---
        if residual is None:
            h = layernorm(x, layer['ln1_w'], layer['ln1_b'], eps)
            residual = x
        else:
            h, residual = add_layernorm(x, residual, layer['ln1_w'],
                                        layer['ln1_b'], eps)
        # --- attention ---
        qkv = matmul_bias(h, layer['qkv_w'], layer['qkv_b'])
        q = qkv[:, :H * Dh].reshape(B, S, H, Dh)
        k = qkv[:, H * Dh:(H + Hkv) * Dh].reshape(B, S, Hkv, Dh)
        v = qkv[:, (H + Hkv) * Dh:].reshape(B, S, Hkv, Dh)
        q, k = apply_rotary(q, k, cos, sin, q_scale=scale)       # scale folded into q
        q = q.transpose(0, 2, 1, 3)                              # (B, H, S, Dh)
        k = k.transpose(0, 2, 1, 3)                              # (B, Hkv, S, Dh)
        v = v.transpose(0, 2, 1, 3)
        attn = flash_attention(q, k, v)                          # GQA + causal tri-grid
        attn = attn.transpose(0, 2, 1, 3).reshape(T, H * Dh)
        attn_out = matmul_bias(attn, layer['o_w'], layer['o_b'])
        # --- post-attention layernorm + residual add + fused router gate ---
        h, residual, router_logits = add_layernorm_gate(
            attn_out, residual, layer['ln2_w'], layer['ln2_b'],
            layer['gate_wp'], eps)
        router_logits = router_logits[:, :E]
        # --- sparse MoE (token-grouped) ---
        topk_w, topk_ids = sparsemixer(router_logits, cfg['router_jitter_noise'])
        x = fused_moe(h, layer['w13'], layer['w2'], topk_w, topk_ids, E)

    out, _ = add_layernorm(x, residual, params['norm_w'], params['norm_b'], eps)
    return out.reshape(B, S, D)


if __name__ == "__main__":
    key = jax.random.PRNGKey(0)
    pkey, ikey = jax.random.split(key)
    params = init_params(pkey, CFG)
    params = prepare_params(params, CFG)   # one-time weight pad / w1||w3 fusion (not per-step)

    B, S = 2, 8
    input_ids = jax.random.randint(ikey, (B, S), 0, CFG['vocab_size'])

    fwd = jax.jit(lambda p, ids: phimoe_forward(p, ids, CFG))
    out = fwd(params, input_ids)
    out = jax.block_until_ready(out)

    assert out.shape == (B, S, CFG['hidden_size'])
    assert bool(jnp.all(jnp.isfinite(out.astype(jnp.float32))))
    print("KERNEL_OK")
</pallas_src>

<mosaic_0001>
module attributes {stable_mosaic.version = 11 : i64} {
  func.func private @main(%arg0: i32) attributes {dimension_semantics = [#tpu.dimension_semantics<core_parallel>], iteration_bounds = array<i64: 2>, tpu.core_type = #tpu.core_type<sc_scalar_subcore>, window_params = []} {
    return
  }
}

module attributes {stable_mosaic.version = 11 : i64} {
  func.func private @main(%arg0: i32) attributes {dimension_semantics = [#tpu.dimension_semantics<core_parallel>], iteration_bounds = array<i64: 2>, tpu.core_type = #tpu.core_type<sc_scalar_subcore>, window_params = []} {
    return
  }
}

module attributes {stable_mosaic.version = 11 : i64} {
  func.func @_flash_attn_kernel(%arg0: i32, %arg1: i32, %arg2: i32, %arg3: memref<1xi32, #tpu.memory_space<smem>>, %arg4: memref<1xi32, #tpu.memory_space<smem>>, %arg5: memref<1x1x2x8x8xbf16, #tpu.memory_space<vmem>>, %arg6: memref<1x1x8x8xbf16, #tpu.memory_space<vmem>>, %arg7: memref<1x1x8x8xbf16, #tpu.memory_space<vmem>>, %arg8: memref<1x1x2x8x8xbf16, #tpu.memory_space<vmem>>, %arg9: memref<16x1xf32, #tpu.memory_space<vmem>>, %arg10: memref<16x1xf32, #tpu.memory_space<vmem>>, %arg11: memref<16x8xf32, #tpu.memory_space<vmem>>) attributes {dimension_semantics = [#tpu.dimension_semantics<parallel>, #tpu.dimension_semantics<parallel>, #tpu.dimension_semantics<arbitrary>], iteration_bounds = array<i64: 2, 2, 1>, scalar_prefetch = 2 : i64, scratch_operands = 3 : i64, tpu.core_type = #tpu.core_type<tc>, window_params = [{transform_indices = @transform_0, window_bounds = array<i64: 1, 1, 2, 8, 8>}, {transform_indices = @transform_1, window_bounds = array<i64: 1, 1, 8, 8>}, {transform_indices = @transform_2, window_bounds = array<i64: 1, 1, 8, 8>}, {transform_indices = @transform_3, window_bounds = array<i64: 1, 1, 2, 8, 8>}]} {
    %0 = arith.index_cast %arg2 : i32 to index
    %1 = memref.load %arg3[%0] : memref<1xi32, #tpu.memory_space<smem>>
    %2 = arith.index_cast %arg2 : i32 to index
    %3 = memref.load %arg4[%2] : memref<1xi32, #tpu.memory_space<smem>>
    %c0_i32 = arith.constant 0 : i32
    %4 = arith.cmpi eq, %3, %c0_i32 : i32
    %5 = arith.extui %4 : i1 to i32
    %c0_i32_0 = arith.constant 0 : i32
    %6 = arith.cmpi ne, %5, %c0_i32_0 : i32
    scf.if %6 {
      %cst_11 = arith.constant -1.000000e+30 : f32
      %19 = vector.broadcast %cst_11 : f32 to vector<16x1xf32>
      %c0_12 = arith.constant 0 : index
      %c0_13 = arith.constant 0 : index
      %20 = vector.load %arg9[%c0_12, %c0_13] : memref<16x1xf32, #tpu.memory_space<vmem>>, vector<16x1xf32>
      tpu.vector_store %arg9[%c0_12, %c0_13], %19 {strides = array<i32>} : memref<16x1xf32, #tpu.memory_space<vmem>>, vector<16x1xf32>,
      %cst_14 = arith.constant 0.000000e+00 : f32
      %21 = vector.broadcast %cst_14 : f32 to vector<16x1xf32>
      %c0_15 = arith.constant 0 : index
      %c0_16 = arith.constant 0 : index
      %22 = vector.load %arg10[%c0_15, %c0_16] : memref<16x1xf32, #tpu.memory_space<vmem>>, vector<16x1xf32>
      tpu.vector_store %arg10[%c0_15, %c0_16], %21 {strides = array<i32>} : memref<16x1xf32, #tpu.memory_space<vmem>>, vector<16x1xf32>,
      %cst_17 = arith.constant 0.000000e+00 : f32
      %23 = vector.broadcast %cst_17 : f32 to vector<16x8xf32>
      %c0_18 = arith.constant 0 : index
      %c0_19 = arith.constant 0 : index
      %24 = vector.load %arg11[%c0_18, %c0_19] : memref<16x8xf32, #tpu.memory_space<vmem>>, vector<16x8xf32>
      tpu.vector_store %arg11[%c0_18, %c0_19], %23 {strides = array<i32>} : memref<16x8xf32, #tpu.memory_space<vmem>>, vector<16x8xf32>,
    } else {
    }
    %c0 = arith.constant 0 : index
    %c0_1 = arith.constant 0 : index
    %c0_2 = arith.constant 0 : index
    %c0_3 = arith.constant 0 : index
    %c0_4 = arith.constant 0 : index
    %7 = vector.load %arg5[%c0, %c0_1, %c0_2, %c0_3, %c0_4] : memref<1x1x2x8x8xbf16, #tpu.memory_space<vmem>>, vector<1x1x2x8x8xbf16>
    %8 = vector.shape_cast %7 : vector<1x1x2x8x8xbf16> to vector<2x8x8xbf16>
    %9 = vector.shape_cast %8 : vector<2x8x8xbf16> to vector<16x8xbf16>
    %c0_5 = arith.constant 0 : index
    %c0_6 = arith.constant 0 : index
    %c0_7 = arith.constant 0 : index
    %c0_8 = arith.constant 0 : index
    %10 = vector.load %arg6[%c0_5, %c0_6, %c0_7, %c0_8] : memref<1x1x8x8xbf16, #tpu.memory_space<vmem>>, vector<1x1x8x8xbf16>
    %11 = vector.shape_cast %10 : vector<1x1x8x8xbf16> to vector<8x8xbf16>
    %cst = arith.constant dense<0.000000e+00> : vector<16x8xf32>
    %12 = tpu.matmul %9, %11, %cst {dimension_numbers = #tpu.dot_dimension_numbers<[1], [1], [0], [0], [0, 0, 1, 0], [], []>} : vector<16x8xbf16>, vector<8x8xbf16>, vector<16x8xf32> -> vector<16x8xf32>
    %13 = arith.cmpi eq, %3, %1 : i32
    %14 = arith.extui %13 : i1 to i32
    %c0_i32_9 = arith.constant 0 : i32
    %15 = arith.cmpi ne, %14, %c0_i32_9 : i32
    scf.if %15 {
      %19 = tpu.iota {dimensions = array<i32: 1>} : vector<2x8x8xi32>
      %20 = tpu.iota {dimensions = array<i32: 2>} : vector<2x8x8xi32>
      %21 = arith.cmpi sle, %20, %19 : vector<2x8x8xi32>
      %22 = vector.shape_cast %12 : vector<16x8xf32> to vector<2x8x8xf32>
      %cst_11 = arith.constant -1.000000e+30 : f32
      %23 = vector.broadcast %cst_11 : f32 to vector<2x8x8xf32>
      %24 = arith.select %21, %22, %23 : vector<2x8x8xi1>, vector<2x8x8xf32>
      %25 = vector.shape_cast %24 : vector<2x8x8xf32> to vector<16x8xf32>
      %c0_12 = arith.constant 0 : index
      %c0_13 = arith.constant 0 : index
      %26 = vector.load %arg9[%c0_12, %c0_13] : memref<16x1xf32, #tpu.memory_space<vmem>>, vector<16x1xf32>
      %cst_14 = arith.constant dense<0xFF800000> : vector<16xf32>
      %27 = vector.multi_reduction <maximumf>, %25, %cst_14 [1] : vector<16x8xf32> to vector<16xf32>
      %28 = vector.shape_cast %27 : vector<16xf32> to vector<16x1xf32>
      %29 = arith.maximumf %26, %28 : vector<16x1xf32>
      %30 = arith.subf %26, %29 : vector<16x1xf32>
      %31 = math.exp %30 : vector<16x1xf32>
      %32 = vector.broadcast %29 : vector<16x1xf32> to vector<16x8xf32>
      %33 = arith.subf %25, %32 : vector<16x8xf32>
      %34 = math.exp %33 : vector<16x8xf32>
      %c0_15 = arith.constant 0 : index
      %c0_16 = arith.constant 0 : index
      %35 = vector.load %arg10[%c0_15, %c0_16] : memref<16x1xf32, #tpu.memory_space<vmem>>, vector<16x1xf32>
      %36 = arith.mulf %31, %35 : vector<16x1xf32>
      %cst_17 = arith.constant dense<0.000000e+00> : vector<16xf32>
      %37 = vector.multi_reduction <add>, %34, %cst_17 [1] : vector<16x8xf32> to vector<16xf32>
      %38 = vector.shape_cast %37 : vector<16xf32> to vector<16x1xf32>
      %39 = arith.addf %36, %38 : vector<16x1xf32>
      %c0_18 = arith.constant 0 : index
      %c0_19 = arith.constant 0 : index
      %40 = vector.load %arg10[%c0_18, %c0_19] : memref<16x1xf32, #tpu.memory_space<vmem>>, vector<16x1xf32>
      tpu.vector_store %arg10[%c0_18, %c0_19], %39 {strides = array<i32>} : memref<16x1xf32, #tpu.memory_space<vmem>>, vector<16x1xf32>,
      %c0_20 = arith.constant 0 : index
      %c0_21 = arith.constant 0 : index
      %41 = vector.load %arg11[%c0_20, %c0_21] : memref<16x8xf32, #tpu.memory_space<vmem>>, vector<16x8xf32>
      %42 = vector.broadcast %31 : vector<16x1xf32> to vector<16x8xf32>
      %43 = arith.mulf %42, %41 : vector<16x8xf32>
      %44 = arith.truncf %34 : vector<16x8xf32> to vector<16x8xbf16>
      %c0_22 = arith.constant 0 : index
      %c0_23 = arith.constant 0 : index
      %c0_24 = arith.constant 0 : index
      %c0_25 = arith.constant 0 : index
      %45 = vector.load %arg7[%c0_22, %c0_23, %c0_24, %c0_25] : memref<1x1x8x8xbf16, #tpu.memory_space<vmem>>, vector<1x1x8x8xbf16>
      %46 = vector.shape_cast %45 : vector<1x1x8x8xbf16> to vector<8x8xbf16>
      %cst_26 = arith.constant dense<0.000000e+00> : vector<16x8xf32>
      %47 = tpu.matmul %44, %46, %cst_26 {dimension_numbers = #tpu.dot_dimension_numbers<[1], [0], [0], [1], [0, 0, 1, 1], [], []>} : vector<16x8xbf16>, vector<8x8xbf16>, vector<16x8xf32> -> vector<16x8xf32>
      %48 = arith.addf %43, %47 : vector<16x8xf32>
      %c0_27 = arith.constant 0 : index
      %c0_28 = arith.constant 0 : index
      %49 = vector.load %arg11[%c0_27, %c0_28] : memref<16x8xf32, #tpu.memory_space<vmem>>, vector<16x8xf32>
      tpu.vector_store %arg11[%c0_27, %c0_28], %48 {strides = array<i32>} : memref<16x8xf32, #tpu.memory_space<vmem>>, vector<16x8xf32>,
      %c0_29 = arith.constant 0 : index
      %c0_30 = arith.constant 0 : index
      %50 = vector.load %arg9[%c0_29, %c0_30] : memref<16x1xf32, #tpu.memory_space<vmem>>, vector<16x1xf32>
      tpu.vector_store %arg9[%c0_29, %c0_30], %29 {strides = array<i32>} : memref<16x1xf32, #tpu.memory_space<vmem>>, vector<16x1xf32>,
      %c0_31 = arith.constant 0 : index
      %c0_32 = arith.constant 0 : index
      %51 = vector.load %arg11[%c0_31, %c0_32] : memref<16x8xf32, #tpu.memory_space<vmem>>, vector<16x8xf32>
      %c0_33 = arith.constant 0 : index
      %c0_34 = arith.constant 0 : index
      %52 = vector.load %arg10[%c0_33, %c0_34] : memref<16x1xf32, #tpu.memory_space<vmem>>, vector<16x1xf32>
      %53 = vector.broadcast %52 : vector<16x1xf32> to vector<16x8xf32>
      %54 = arith.divf %51, %53 : vector<16x8xf32>
      %55 = vector.shape_cast %54 : vector<16x8xf32> to vector<2x8x8xf32>
      %56 = arith.truncf %55 : vector<2x8x8xf32> to vector<2x8x8xbf16>
      %c0_35 = arith.constant 0 : index
      %c0_36 = arith.constant 0 : index
      %c0_37 = arith.constant 0 : index
      %c0_38 = arith.constant 0 : index
      %c0_39 = arith.constant 0 : index
      %57 = vector.load %arg8[%c0_35, %c0_36, %c0_37, %c0_38, %c0_39] : memref<1x1x2x8x8xbf16, #tpu.memory_space<vmem>>, vector<1x1x2x8x8xbf16>
      %58 = vector.shape_cast %57 : vector<1x1x2x8x8xbf16> to vector<2x8x8xbf16>
      %59 = vector.shape_cast %56 : vector<2x8x8xbf16> to vector<1x1x2x8x8xbf16>
      tpu.vector_store %arg8[%c0_35, %c0_36, %c0_37, %c0_38, %c0_39], %59 {strides = array<i32>} : memref<1x1x2x8x8xbf16, #tpu.memory_space<vmem>>, vector<1x1x2x8x8xbf16>,
    } else {
    }
    %true = arith.constant true
    %16 = arith.xori %13, %true : i1
    %17 = arith.extui %16 : i1 to i32
    %c0_i32_10 = arith.constant 0 : i32
    %18 = arith.cmpi ne, %17, %c0_i32_10 : i32
    scf.if %18 {
      %c0_11 = arith.constant 0 : index
      %c0_12 = arith.constant 0 : index
      %19 = vector.load %arg9[%c0_11, %c0_12] : memref<16x1xf32, #tpu.memory_space<vmem>>, vector<16x1xf32>
      %cst_13 = arith.constant dense<0xFF800000> : vector<16xf32>
      %20 = vector.multi_reduction <maximumf>, %12, %cst_13 [1] : vector<16x8xf32> to vector<16xf32>
      %21 = vector.shape_cast %20 : vector<16xf32> to vector<16x1xf32>
      %22 = arith.maximumf %19, %21 : vector<16x1xf32>
      %23 = arith.subf %19, %22 : vector<16x1xf32>
      %24 = math.exp %23 : vector<16x1xf32>
      %25 = vector.broadcast %22 : vector<16x1xf32> to vector<16x8xf32>
      %26 = arith.subf %12, %25 : vector<16x8xf32>
      %27 = math.exp %26 : vector<16x8xf32>
      %c0_14 = arith.constant 0 : index
      %c0_15 = arith.constant 0 : index
      %28 = vector.load %arg10[%c0_14, %c0_15] : memref<16x1xf32, #tpu.memory_space<vmem>>, vector<16x1xf32>
      %29 = arith.mulf %24, %28 : vector<16x1xf32>
      %cst_16 = arith.constant dense<0.000000e+00> : vector<16xf32>
      %30 = vector.multi_reduction <add>, %27, %cst_16 [1] : vector<16x8xf32> to vector<16xf32>
      %31 = vector.shape_cast %30 : vector<16xf32> to vector<16x1xf32>
      %32 = arith.addf %29, %31 : vector<16x1xf32>
      %c0_17 = arith.constant 0 : index
      %c0_18 = arith.constant 0 : index
      %33 = vector.load %arg10[%c0_17, %c0_18] : memref<16x1xf32, #tpu.memory_space<vmem>>, vector<16x1xf32>
      tpu.vector_store %arg10[%c0_17, %c0_18], %32 {strides = array<i32>} : memref<16x1xf32, #tpu.memory_space<vmem>>, vector<16x1xf32>,
      %c0_19 = arith.constant 0 : index
      %c0_20 = arith.constant 0 : index
      %34 = vector.load %arg11[%c0_19, %c0_20] : memref<16x8xf32, #tpu.memory_space<vmem>>, vector<16x8xf32>
      %35 = vector.broadcast %24 : vector<16x1xf32> to vector<16x8xf32>
      %36 = arith.mulf %35, %34 : vector<16x8xf32>
      %37 = arith.truncf %27 : vector<16x8xf32> to vector<16x8xbf16>
      %c0_21 = arith.constant 0 : index
      %c0_22 = arith.constant 0 : index
      %c0_23 = arith.constant 0 : index
      %c0_24 = arith.constant 0 : index
      %38 = vector.load %arg7[%c0_21, %c0_22, %c0_23, %c0_24] : memref<1x1x8x8xbf16, #tpu.memory_space<vmem>>, vector<1x1x8x8xbf16>
      %39 = vector.shape_cast %38 : vector<1x1x8x8xbf16> to vector<8x8xbf16>
      %cst_25 = arith.constant dense<0.000000e+00> : vector<16x8xf32>
      %40 = tpu.matmul %37, %39, %cst_25 {dimension_numbers = #tpu.dot_dimension_numbers<[1], [0], [0], [1], [0, 0, 1, 1], [], []>} : vector<16x8xbf16>, vector<8x8xbf16>, vector<16x8xf32> -> vector<16x8xf32>
      %41 = arith.addf %36, %40 : vector<16x8xf32>
      %c0_26 = arith.constant 0 : index
      %c0_27 = arith.constant 0 : index
      %42 = vector.load %arg11[%c0_26, %c0_27] : memref<16x8xf32, #tpu.memory_space<vmem>>, vector<16x8xf32>
      tpu.vector_store %arg11[%c0_26, %c0_27], %41 {strides = array<i32>} : memref<16x8xf32, #tpu.memory_space<vmem>>, vector<16x8xf32>,
      %c0_28 = arith.constant 0 : index
      %c0_29 = arith.constant 0 : index
      %43 = vector.load %arg9[%c0_28, %c0_29] : memref<16x1xf32, #tpu.memory_space<vmem>>, vector<16x1xf32>
      tpu.vector_store %arg9[%c0_28, %c0_29], %22 {strides = array<i32>} : memref<16x1xf32, #tpu.memory_space<vmem>>, vector<16x1xf32>,
    } else {
    }
    return
  }
  func.func @transform_0(%arg0: i32, %arg1: i32, %arg2: i32, %arg3: memref<1xi32, #tpu.memory_space<smem>>, %arg4: memref<1xi32, #tpu.memory_space<smem>>) -> (i32, i32, i32, i32, i32) {
    %0 = arith.index_cast %arg2 : i32 to index
    %1 = memref.load %arg3[%0] : memref<1xi32, #tpu.memory_space<smem>>
    %c0_i32 = arith.constant 0 : i32
    %c0_i32_0 = arith.constant 0 : i32
    %c0_i32_1 = arith.constant 0 : i32
    return %arg0, %arg1, %c0_i32, %1, %c0_i32_0 : i32, i32, i32, i32, i32
  }
  func.func @transform_1(%arg0: i32, %arg1: i32, %arg2: i32, %arg3: memref<1xi32, #tpu.memory_space<smem>>, %arg4: memref<1xi32, #tpu.memory_space<smem>>) -> (i32, i32, i32, i32) {
    %0 = arith.index_cast %arg2 : i32 to index
    %1 = memref.load %arg4[%0] : memref<1xi32, #tpu.memory_space<smem>>
    %c0_i32 = arith.constant 0 : i32
    %c0_i32_0 = arith.constant 0 : i32
    return %arg0, %arg1, %1, %c0_i32 : i32, i32, i32, i32
  }
  func.func @transform_2(%arg0: i32, %arg1: i32, %arg2: i32, %arg3: memref<1xi32, #tpu.memory_space<smem>>, %arg4: memref<1xi32, #tpu.memory_space<smem>>) -> (i32, i32, i32, i32) {
    %0 = arith.index_cast %arg2 : i32 to index
    %1 = memref.load %arg4[%0] : memref<1xi32, #tpu.memory_space<smem>>
    %c0_i32 = arith.constant 0 : i32
    %c0_i32_0 = arith.constant 0 : i32
    return %arg0, %arg1, %1, %c0_i32 : i32, i32, i32, i32
  }
  func.func @transform_3(%arg0: i32, %arg1: i32, %arg2: i32, %arg3: memref<1xi32, #tpu.memory_space<smem>>, %arg4: memref<1xi32, #tpu.memory_space<smem>>) -> (i32, i32, i32, i32, i32) {
    %0 = arith.index_cast %arg2 : i32 to index
    %1 = memref.load %arg3[%0] : memref<1xi32, #tpu.memory_space<smem>>
    %c0_i32 = arith.constant 0 : i32
    %c0_i32_0 = arith.constant 0 : i32
    %c0_i32_1 = arith.constant 0 : i32
    return %arg0, %arg1, %c0_i32, %1, %c0_i32_0 : i32, i32, i32, i32, i32
  }
}

module attributes {stable_mosaic.version = 11 : i64} {
  func.func @_matmul_bias_kernel(%arg0: i32, %arg1: i32, %arg2: i32, %arg3: memref<16x32xbf16, #tpu.memory_space<vmem>>, %arg4: memref<32x64xbf16, #tpu.memory_space<vmem>>, %arg5: memref<1x64xbf16, #tpu.memory_space<vmem>>, %arg6: memref<16x64xbf16, #tpu.memory_space<vmem>>, %arg7: memref<16x64xf32, #tpu.memory_space<vmem>>) attributes {dimension_semantics = [#tpu.dimension_semantics<parallel>, #tpu.dimension_semantics<parallel>, #tpu.dimension_semantics<arbitrary>], iteration_bounds = array<i64: 1, 1, 1>, scalar_prefetch = 0 : i64, scratch_operands = 1 : i64, tpu.core_type = #tpu.core_type<tc>, window_params = [{transform_indices = @transform_0, window_bounds = array<i64: 16, 32>}, {transform_indices = @transform_1, window_bounds = array<i64: 32, 64>}, {transform_indices = @transform_2, window_bounds = array<i64: 1, 64>}, {transform_indices = @transform_3, window_bounds = array<i64: 16, 64>}]} {
    %c0_i32 = arith.constant 0 : i32
    %0 = arith.cmpi eq, %arg2, %c0_i32 : i32
    %1 = arith.extui %0 : i1 to i32
    %c0_i32_0 = arith.constant 0 : i32
    %2 = arith.cmpi ne, %1, %c0_i32_0 : i32
    scf.if %2 {
      %cst_10 = arith.constant 0.000000e+00 : f32
      %12 = vector.broadcast %cst_10 : f32 to vector<16x64xf32>
      %c0_11 = arith.constant 0 : index
      %c0_12 = arith.constant 0 : index
      %13 = vector.load %arg7[%c0_11, %c0_12] : memref<16x64xf32, #tpu.memory_space<vmem>>, vector<16x64xf32>
      tpu.vector_store %arg7[%c0_11, %c0_12], %12 {strides = array<i32>} : memref<16x64xf32, #tpu.memory_space<vmem>>, vector<16x64xf32>,
    } else {
    }
    %c0 = arith.constant 0 : index
    %c0_1 = arith.constant 0 : index
    %3 = vector.load %arg7[%c0, %c0_1] : memref<16x64xf32, #tpu.memory_space<vmem>>, vector<16x64xf32>
    %c0_2 = arith.constant 0 : index
    %c0_3 = arith.constant 0 : index
    %4 = vector.load %arg3[%c0_2, %c0_3] : memref<16x32xbf16, #tpu.memory_space<vmem>>, vector<16x32xbf16>
    %c0_4 = arith.constant 0 : index
    %c0_5 = arith.constant 0 : index
    %5 = vector.load %arg4[%c0_4, %c0_5] : memref<32x64xbf16, #tpu.memory_space<vmem>>, vector<32x64xbf16>
    %cst = arith.constant dense<0.000000e+00> : vector<16x64xf32>
    %6 = tpu.matmul %4, %5, %cst {dimension_numbers = #tpu.dot_dimension_numbers<[1], [0], [0], [1], [0, 0, 1, 1], [], []>} : vector<16x32xbf16>, vector<32x64xbf16>, vector<16x64xf32> -> vector<16x64xf32>
    %7 = arith.addf %3, %6 : vector<16x64xf32>
    %c0_6 = arith.constant 0 : index
    %c0_7 = arith.constant 0 : index
    %8 = vector.load %arg7[%c0_6, %c0_7] : memref<16x64xf32, #tpu.memory_space<vmem>>, vector<16x64xf32>
    tpu.vector_store %arg7[%c0_6, %c0_7], %7 {strides = array<i32>} : memref<16x64xf32, #tpu.memory_space<vmem>>, vector<16x64xf32>,
    %c0_i32_8 = arith.constant 0 : i32
    %9 = arith.cmpi eq, %arg2, %c0_i32_8 : i32
    %10 = arith.extui %9 : i1 to i32
    %c0_i32_9 = arith.constant 0 : i32
    %11 = arith.cmpi ne, %10, %c0_i32_9 : i32
    scf.if %11 {
      %c0_10 = arith.constant 0 : index
      %c0_11 = arith.constant 0 : index
      %12 = vector.load %arg7[%c0_10, %c0_11] : memref<16x64xf32, #tpu.memory_space<vmem>>, vector<16x64xf32>
      %c0_12 = arith.constant 0 : index
      %c0_13 = arith.constant 0 : index
      %13 = vector.load %arg5[%c0_12, %c0_13] : memref<1x64xbf16, #tpu.memory_space<vmem>>, vector<1x64xbf16>
      %14 = arith.extf %13 : vector<1x64xbf16> to vector<1x64xf32>
      %15 = vector.broadcast %14 : vector<1x64xf32> to vector<16x64xf32>
      %16 = arith.addf %12, %15 : vector<16x64xf32>
      %17 = arith.truncf %16 : vector<16x64xf32> to vector<16x64xbf16>
      %c0_14 = arith.constant 0 : index
      %c0_15 = arith.constant 0 : index
      %18 = vector.load %arg6[%c0_14, %c0_15] : memref<16x64xbf16, #tpu.memory_space<vmem>>, vector<16x64xbf16>
      tpu.vector_store %arg6[%c0_14, %c0_15], %17 {strides = array<i32>} : memref<16x64xbf16, #tpu.memory_space<vmem>>, vector<16x64xbf16>,
    } else {
    }
    return
  }
  func.func @transform_0(%arg0: i32, %arg1: i32, %arg2: i32) -> (i32, i32) {
    %c0_i32 = arith.constant 0 : i32
    return %arg0, %arg2 : i32, i32
  }
  func.func @transform_1(%arg0: i32, %arg1: i32, %arg2: i32) -> (i32, i32) {
    %c0_i32 = arith.constant 0 : i32
    return %arg2, %arg1 : i32, i32
  }
  func.func @transform_2(%arg0: i32, %arg1: i32, %arg2: i32) -> (i32, i32) {
    %c0_i32 = arith.constant 0 : i32
    %c0_i32_0 = arith.constant 0 : i32
    return %c0_i32, %arg1 : i32, i32
  }
  func.func @transform_3(%arg0: i32, %arg1: i32, %arg2: i32) -> (i32, i32) {
    %c0_i32 = arith.constant 0 : i32
    return %arg0, %arg1 : i32, i32
  }
}

module attributes {stable_mosaic.version = 11 : i64} {
  func.func @_layernorm_kernel(%arg0: i32, %arg1: memref<16x32xbf16, #tpu.memory_space<vmem>>, %arg2: memref<1x32xbf16, #tpu.memory_space<vmem>>, %arg3: memref<1x32xbf16, #tpu.memory_space<vmem>>, %arg4: memref<16x32xbf16, #tpu.memory_space<vmem>>) attributes {dimension_semantics = [#tpu.dimension_semantics<parallel>], iteration_bounds = array<i64: 1>, scalar_prefetch = 0 : i64, scratch_operands = 0 : i64, tpu.core_type = #tpu.core_type<tc>, window_params = [{transform_indices = @transform_0, window_bounds = array<i64: 16, 32>}, {pipeline_mode = #tpu.pipeline_mode<synchronous>, transform_indices = @transform_1, window_bounds = array<i64: 1, 32>}, {pipeline_mode = #tpu.pipeline_mode<synchronous>, transform_indices = @transform_2, window_bounds = array<i64: 1, 32>}, {transform_indices = @transform_3, window_bounds = array<i64: 16, 32>}]} {
    %c0 = arith.constant 0 : index
    %c0_0 = arith.constant 0 : index
    %0 = vector.load %arg1[%c0, %c0_0] : memref<16x32xbf16, #tpu.memory_space<vmem>>, vector<16x32xbf16>
    %1 = arith.extf %0 : vector<16x32xbf16> to vector<16x32xf32>
    %cst = arith.constant dense<0.000000e+00> : vector<16xf32>
    %2 = vector.multi_reduction <add>, %1, %cst [1] : vector<16x32xf32> to vector<16xf32>
    %3 = vector.shape_cast %2 : vector<16xf32> to vector<16x1xf32>
    %cst_1 = arith.constant 3.200000e+01 : f32
    %4 = vector.broadcast %cst_1 : f32 to vector<16x1xf32>
    %5 = arith.divf %3, %4 : vector<16x1xf32>
    %6 = vector.broadcast %5 : vector<16x1xf32> to vector<16x32xf32>
    %7 = arith.subf %1, %6 : vector<16x32xf32>
    %8 = arith.mulf %7, %7 : vector<16x32xf32>
    %cst_2 = arith.constant dense<0.000000e+00> : vector<16xf32>
    %9 = vector.multi_reduction <add>, %8, %cst_2 [1] : vector<16x32xf32> to vector<16xf32>
    %10 = vector.shape_cast %9 : vector<16xf32> to vector<16x1xf32>
    %cst_3 = arith.constant 3.200000e+01 : f32
    %11 = vector.broadcast %cst_3 : f32 to vector<16x1xf32>
    %12 = arith.divf %10, %11 : vector<16x1xf32>
    %cst_4 = arith.constant 9.99999974E-6 : f32
    %13 = vector.broadcast %cst_4 : f32 to vector<16x1xf32>
    %14 = arith.addf %12, %13 : vector<16x1xf32>
    %15 = math.rsqrt %14 : vector<16x1xf32>
    %16 = vector.broadcast %15 : vector<16x1xf32> to vector<16x32xf32>
    %17 = arith.mulf %7, %16 : vector<16x32xf32>
    %c0_5 = arith.constant 0 : index
    %c0_6 = arith.constant 0 : index
    %18 = vector.load %arg2[%c0_5, %c0_6] : memref<1x32xbf16, #tpu.memory_space<vmem>>, vector<1x32xbf16>
    %19 = arith.extf %18 : vector<1x32xbf16> to vector<1x32xf32>
    %20 = vector.broadcast %19 : vector<1x32xf32> to vector<16x32xf32>
    %21 = arith.mulf %17, %20 : vector<16x32xf32>
    %c0_7 = arith.constant 0 : index
    %c0_8 = arith.constant 0 : index
    %22 = vector.load %arg3[%c0_7, %c0_8] : memref<1x32xbf16, #tpu.memory_space<vmem>>, vector<1x32xbf16>
    %23 = arith.extf %22 : vector<1x32xbf16> to vector<1x32xf32>
    %24 = vector.broadcast %23 : vector<1x32xf32> to vector<16x32xf32>
    %25 = arith.addf %21, %24 : vector<16x32xf32>
    %26 = arith.truncf %25 : vector<16x32xf32> to vector<16x32xbf16>
    %c0_9 = arith.constant 0 : index
    %c0_10 = arith.constant 0 : index
    %27 = vector.load %arg4[%c0_9, %c0_10] : memref<16x32xbf16, #tpu.memory_space<vmem>>, vector<16x32xbf16>
    tpu.vector_store %arg4[%c0_9, %c0_10], %26 {strides = array<i32>} : memref<16x32xbf16, #tpu.memory_space<vmem>>, vector<16x32xbf16>,
    return
  }
  func.func @transform_0(%arg0: i32) -> (i32, i32) {
    %c0_i32 = arith.constant 0 : i32
    %c0_i32_0 = arith.constant 0 : i32
    return %arg0, %c0_i32 : i32, i32
  }
  func.func @transform_1(%arg0: i32) -> (i32, i32) {
    %c0_i32 = arith.constant 0 : i32
    %c0_i32_0 = arith.constant 0 : i32
    %c0_i32_1 = arith.constant 0 : i32
    return %c0_i32, %c0_i32_0 : i32, i32
  }
  func.func @transform_2(%arg0: i32) -> (i32, i32) {
    %c0_i32 = arith.constant 0 : i32
    %c0_i32_0 = arith.constant 0 : i32
    %c0_i32_1 = arith.constant 0 : i32
    return %c0_i32, %c0_i32_0 : i32, i32
  }
  func.func @transform_3(%arg0: i32) -> (i32, i32) {
    %c0_i32 = arith.constant 0 : i32
    %c0_i32_0 = arith.constant 0 : i32
    return %arg0, %c0_i32 : i32, i32
  }
}

module attributes {stable_mosaic.version = 11 : i64} {
  func.func @_matmul_bias_kernel(%arg0: i32, %arg1: i32, %arg2: i32, %arg3: memref<16x32xbf16, #tpu.memory_space<vmem>>, %arg4: memref<32x32xbf16, #tpu.memory_space<vmem>>, %arg5: memref<1x32xbf16, #tpu.memory_space<vmem>>, %arg6: memref<16x32xbf16, #tpu.memory_space<vmem>>, %arg7: memref<16x32xf32, #tpu.memory_space<vmem>>) attributes {dimension_semantics = [#tpu.dimension_semantics<parallel>, #tpu.dimension_semantics<parallel>, #tpu.dimension_semantics<arbitrary>], iteration_bounds = array<i64: 1, 1, 1>, scalar_prefetch = 0 : i64, scratch_operands = 1 : i64, tpu.core_type = #tpu.core_type<tc>, window_params = [{transform_indices = @transform_0, window_bounds = array<i64: 16, 32>}, {transform_indices = @transform_1, window_bounds = array<i64: 32, 32>}, {transform_indices = @transform_2, window_bounds = array<i64: 1, 32>}, {transform_indices = @transform_3, window_bounds = array<i64: 16, 32>}]} {
    %c0_i32 = arith.constant 0 : i32
    %0 = arith.cmpi eq, %arg2, %c0_i32 : i32
    %1 = arith.extui %0 : i1 to i32
    %c0_i32_0 = arith.constant 0 : i32
    %2 = arith.cmpi ne, %1, %c0_i32_0 : i32
    scf.if %2 {
      %cst_10 = arith.constant 0.000000e+00 : f32
      %12 = vector.broadcast %cst_10 : f32 to vector<16x32xf32>
      %c0_11 = arith.constant 0 : index
      %c0_12 = arith.constant 0 : index
      %13 = vector.load %arg7[%c0_11, %c0_12] : memref<16x32xf32, #tpu.memory_space<vmem>>, vector<16x32xf32>
      tpu.vector_store %arg7[%c0_11, %c0_12], %12 {strides = array<i32>} : memref<16x32xf32, #tpu.memory_space<vmem>>, vector<16x32xf32>,
    } else {
    }
    %c0 = arith.constant 0 : index
    %c0_1 = arith.constant 0 : index
    %3 = vector.load %arg7[%c0, %c0_1] : memref<16x32xf32, #tpu.memory_space<vmem>>, vector<16x32xf32>
    %c0_2 = arith.constant 0 : index
    %c0_3 = arith.constant 0 : index
    %4 = vector.load %arg3[%c0_2, %c0_3] : memref<16x32xbf16, #tpu.memory_space<vmem>>, vector<16x32xbf16>
    %c0_4 = arith.constant 0 : index
    %c0_5 = arith.constant 0 : index
    %5 = vector.load %arg4[%c0_4, %c0_5] : memref<32x32xbf16, #tpu.memory_space<vmem>>, vector<32x32xbf16>
    %cst = arith.constant dense<0.000000e+00> : vector<16x32xf32>
    %6 = tpu.matmul %4, %5, %cst {dimension_numbers = #tpu.dot_dimension_numbers<[1], [0], [0], [1], [0, 0, 1, 1], [], []>} : vector<16x32xbf16>, vector<32x32xbf16>, vector<16x32xf32> -> vector<16x32xf32>
    %7 = arith.addf %3, %6 : vector<16x32xf32>
    %c0_6 = arith.constant 0 : index
    %c0_7 = arith.constant 0 : index
    %8 = vector.load %arg7[%c0_6, %c0_7] : memref<16x32xf32, #tpu.memory_space<vmem>>, vector<16x32xf32>
    tpu.vector_store %arg7[%c0_6, %c0_7], %7 {strides = array<i32>} : memref<16x32xf32, #tpu.memory_space<vmem>>, vector<16x32xf32>,
    %c0_i32_8 = arith.constant 0 : i32
    %9 = arith.cmpi eq, %arg2, %c0_i32_8 : i32
    %10 = arith.extui %9 : i1 to i32
    %c0_i32_9 = arith.constant 0 : i32
    %11 = arith.cmpi ne, %10, %c0_i32_9 : i32
    scf.if %11 {
      %c0_10 = arith.constant 0 : index
      %c0_11 = arith.constant 0 : index
      %12 = vector.load %arg7[%c0_10, %c0_11] : memref<16x32xf32, #tpu.memory_space<vmem>>, vector<16x32xf32>
      %c0_12 = arith.constant 0 : index
      %c0_13 = arith.constant 0 : index
      %13 = vector.load %arg5[%c0_12, %c0_13] : memref<1x32xbf16, #tpu.memory_space<vmem>>, vector<1x32xbf16>
      %14 = arith.extf %13 : vector<1x32xbf16> to vector<1x32xf32>
      %15 = vector.broadcast %14 : vector<1x32xf32> to vector<16x32xf32>
      %16 = arith.addf %12, %15 : vector<16x32xf32>
      %17 = arith.truncf %16 : vector<16x32xf32> to vector<16x32xbf16>
      %c0_14 = arith.constant 0 : index
      %c0_15 = arith.constant 0 : index
      %18 = vector.load %arg6[%c0_14, %c0_15] : memref<16x32xbf16, #tpu.memory_space<vmem>>, vector<16x32xbf16>
      tpu.vector_store %arg6[%c0_14, %c0_15], %17 {strides = array<i32>} : memref<16x32xbf16, #tpu.memory_space<vmem>>, vector<16x32xbf16>,
    } else {
    }
    return
  }
  func.func @transform_0(%arg0: i32, %arg1: i32, %arg2: i32) -> (i32, i32) {
    %c0_i32 = arith.constant 0 : i32
    return %arg0, %arg2 : i32, i32
  }
  func.func @transform_1(%arg0: i32, %arg1: i32, %arg2: i32) -> (i32, i32) {
    %c0_i32 = arith.constant 0 : i32
    return %arg2, %arg1 : i32, i32
  }
  func.func @transform_2(%arg0: i32, %arg1: i32, %arg2: i32) -> (i32, i32) {
    %c0_i32 = arith.constant 0 : i32
    %c0_i32_0 = arith.constant 0 : i32
    return %c0_i32, %arg1 : i32, i32
  }
  func.func @transform_3(%arg0: i32, %arg1: i32, %arg2: i32) -> (i32, i32) {
    %c0_i32 = arith.constant 0 : i32
    return %arg0, %arg1 : i32, i32
  }
}

module attributes {stable_mosaic.version = 11 : i64} {
  func.func @_add_layernorm_gate_kernel(%arg0: i32, %arg1: memref<16x32xbf16, #tpu.memory_space<vmem>>, %arg2: memref<16x32xbf16, #tpu.memory_space<vmem>>, %arg3: memref<1x32xbf16, #tpu.memory_space<vmem>>, %arg4: memref<1x32xbf16, #tpu.memory_space<vmem>>, %arg5: memref<32x128xbf16, #tpu.memory_space<vmem>>, %arg6: memref<16x32xbf16, #tpu.memory_space<vmem>>, %arg7: memref<16x32xbf16, #tpu.memory_space<vmem>>, %arg8: memref<16x128xf32, #tpu.memory_space<vmem>>) attributes {dimension_semantics = [#tpu.dimension_semantics<parallel>], iteration_bounds = array<i64: 1>, scalar_prefetch = 0 : i64, scratch_operands = 0 : i64, tpu.core_type = #tpu.core_type<tc>, window_params = [{transform_indices = @transform_0, window_bounds = array<i64: 16, 32>}, {transform_indices = @transform_1, window_bounds = array<i64: 16, 32>}, {pipeline_mode = #tpu.pipeline_mode<synchronous>, transform_indices = @transform_2, window_bounds = array<i64: 1, 32>}, {pipeline_mode = #tpu.pipeline_mode<synchronous>, transform_indices = @transform_3, window_bounds = array<i64: 1, 32>}, {pipeline_mode = #tpu.pipeline_mode<synchronous>, transform_indices = @transform_4, window_bounds = array<i64: 32, 128>}, {transform_indices = @transform_5, window_bounds = array<i64: 16, 32>}, {transform_indices = @transform_6, window_bounds = array<i64: 16, 32>}, {transform_indices = @transform_7, window_bounds = array<i64: 16, 128>}]} {
    %c0 = arith.constant 0 : index
    %c0_0 = arith.constant 0 : index
    %0 = vector.load %arg1[%c0, %c0_0] : memref<16x32xbf16, #tpu.memory_space<vmem>>, vector<16x32xbf16>
    %1 = arith.extf %0 : vector<16x32xbf16> to vector<16x32xf32>
    %c0_1 = arith.constant 0 : index
    %c0_2 = arith.constant 0 : index
    %2 = vector.load %arg2[%c0_1, %c0_2] : memref<16x32xbf16, #tpu.memory_space<vmem>>, vector<16x32xbf16>
    %3 = arith.extf %2 : vector<16x32xbf16> to vector<16x32xf32>
    %4 = arith.addf %1, %3 : vector<16x32xf32>
    %cst = arith.constant dense<0.000000e+00> : vector<16xf32>
    %5 = vector.multi_reduction <add>, %4, %cst [1] : vector<16x32xf32> to vector<16xf32>
    %6 = vector.shape_cast %5 : vector<16xf32> to vector<16x1xf32>
    %cst_3 = arith.constant 3.200000e+01 : f32
    %7 = vector.broadcast %cst_3 : f32 to vector<16x1xf32>
    %8 = arith.divf %6, %7 : vector<16x1xf32>
    %9 = vector.broadcast %8 : vector<16x1xf32> to vector<16x32xf32>
    %10 = arith.subf %4, %9 : vector<16x32xf32>
    %11 = arith.mulf %10, %10 : vector<16x32xf32>
    %cst_4 = arith.constant dense<0.000000e+00> : vector<16xf32>
    %12 = vector.multi_reduction <add>, %11, %cst_4 [1] : vector<16x32xf32> to vector<16xf32>
    %13 = vector.shape_cast %12 : vector<16xf32> to vector<16x1xf32>
    %cst_5 = arith.constant 3.200000e+01 : f32
    %14 = vector.broadcast %cst_5 : f32 to vector<16x1xf32>
    %15 = arith.divf %13, %14 : vector<16x1xf32>
    %cst_6 = arith.constant 9.99999974E-6 : f32
    %16 = vector.broadcast %cst_6 : f32 to vector<16x1xf32>
    %17 = arith.addf %15, %16 : vector<16x1xf32>
    %18 = math.rsqrt %17 : vector<16x1xf32>
    %19 = vector.broadcast %18 : vector<16x1xf32> to vector<16x32xf32>
    %20 = arith.mulf %10, %19 : vector<16x32xf32>
    %c0_7 = arith.constant 0 : index
    %c0_8 = arith.constant 0 : index
    %21 = vector.load %arg3[%c0_7, %c0_8] : memref<1x32xbf16, #tpu.memory_space<vmem>>, vector<1x32xbf16>
    %22 = arith.extf %21 : vector<1x32xbf16> to vector<1x32xf32>
    %23 = vector.broadcast %22 : vector<1x32xf32> to vector<16x32xf32>
    %24 = arith.mulf %20, %23 : vector<16x32xf32>
    %c0_9 = arith.constant 0 : index
    %c0_10 = arith.constant 0 : index
    %25 = vector.load %arg4[%c0_9, %c0_10] : memref<1x32xbf16, #tpu.memory_space<vmem>>, vector<1x32xbf16>
    %26 = arith.extf %25 : vector<1x32xbf16> to vector<1x32xf32>
    %27 = vector.broadcast %26 : vector<1x32xf32> to vector<16x32xf32>
    %28 = arith.addf %24, %27 : vector<16x32xf32>
    %29 = arith.truncf %28 : vector<16x32xf32> to vector<16x32xbf16>
    %c0_11 = arith.constant 0 : index
    %c0_12 = arith.constant 0 : index
    %30 = vector.load %arg6[%c0_11, %c0_12] : memref<16x32xbf16, #tpu.memory_space<vmem>>, vector<16x32xbf16>
    tpu.vector_store %arg6[%c0_11, %c0_12], %29 {strides = array<i32>} : memref<16x32xbf16, #tpu.memory_space<vmem>>, vector<16x32xbf16>,
    %31 = arith.truncf %4 : vector<16x32xf32> to vector<16x32xbf16>
    %c0_13 = arith.constant 0 : index
    %c0_14 = arith.constant 0 : index
    %32 = vector.load %arg7[%c0_13, %c0_14] : memref<16x32xbf16, #tpu.memory_space<vmem>>, vector<16x32xbf16>
    tpu.vector_store %arg7[%c0_13, %c0_14], %31 {strides = array<i32>} : memref<16x32xbf16, #tpu.memory_space<vmem>>, vector<16x32xbf16>,
    %33 = arith.truncf %28 : vector<16x32xf32> to vector<16x32xbf16>
    %c0_15 = arith.constant 0 : index
    %c0_16 = arith.constant 0 : index
    %34 = vector.load %arg5[%c0_15, %c0_16] : memref<32x128xbf16, #tpu.memory_space<vmem>>, vector<32x128xbf16>
    %cst_17 = arith.constant dense<0.000000e+00> : vector<16x128xf32>
    %35 = tpu.matmul %33, %34, %cst_17 {dimension_numbers = #tpu.dot_dimension_numbers<[1], [0], [0], [1], [0, 0, 1, 1], [], []>} : vector<16x32xbf16>, vector<32x128xbf16>, vector<16x128xf32> -> vector<16x128xf32>
    %c0_18 = arith.constant 0 : index
    %c0_19 = arith.constant 0 : index
    %36 = vector.load %arg8[%c0_18, %c0_19] : memref<16x128xf32, #tpu.memory_space<vmem>>, vector<16x128xf32>
    tpu.vector_store %arg8[%c0_18, %c0_19], %35 {strides = array<i32>} : memref<16x128xf32, #tpu.memory_space<vmem>>, vector<16x128xf32>,
    return
  }
  func.func @transform_0(%arg0: i32) -> (i32, i32) {
    %c0_i32 = arith.constant 0 : i32
    %c0_i32_0 = arith.constant 0 : i32
    return %arg0, %c0_i32 : i32, i32
  }
  func.func @transform_1(%arg0: i32) -> (i32, i32) {
    %c0_i32 = arith.constant 0 : i32
    %c0_i32_0 = arith.constant 0 : i32
    return %arg0, %c0_i32 : i32, i32
  }
  func.func @transform_2(%arg0: i32) -> (i32, i32) {
    %c0_i32 = arith.constant 0 : i32
    %c0_i32_0 = arith.constant 0 : i32
    %c0_i32_1 = arith.constant 0 : i32
    return %c0_i32, %c0_i32_0 : i32, i32
  }
  func.func @transform_3(%arg0: i32) -> (i32, i32) {
    %c0_i32 = arith.constant 0 : i32
    %c0_i32_0 = arith.constant 0 : i32
    %c0_i32_1 = arith.constant 0 : i32
    return %c0_i32, %c0_i32_0 : i32, i32
  }
  func.func @transform_4(%arg0: i32) -> (i32, i32) {
    %c0_i32 = arith.constant 0 : i32
    %c0_i32_0 = arith.constant 0 : i32
    %c0_i32_1 = arith.constant 0 : i32
    return %c0_i32, %c0_i32_0 : i32, i32
  }
  func.func @transform_5(%arg0: i32) -> (i32, i32) {
    %c0_i32 = arith.constant 0 : i32
    %c0_i32_0 = arith.constant 0 : i32
    return %arg0, %c0_i32 : i32, i32
  }
  func.func @transform_6(%arg0: i32) -> (i32, i32) {
    %c0_i32 = arith.constant 0 : i32
    %c0_i32_0 = arith.constant 0 : i32
    return %arg0, %c0_i32 : i32, i32
  }
  func.func @transform_7(%arg0: i32) -> (i32, i32) {
    %c0_i32 = arith.constant 0 : i32
    %c0_i32_0 = arith.constant 0 : i32
    return %arg0, %c0_i32 : i32, i32
  }
}

module attributes {stable_mosaic.version = 11 : i64} {
  func.func @_moe_tile_kernel(%arg0: i32, %arg1: i32, %arg2: memref<6xi32, #tpu.memory_space<smem>>, %arg3: memref<16x32xbf16, #tpu.memory_space<vmem>>, %arg4: memref<1x2x32x64xbf16, #tpu.memory_space<vmem>>, %arg5: memref<1x64x32xbf16, #tpu.memory_space<vmem>>, %arg6: memref<16x1xf32, #tpu.memory_space<vmem>>, %arg7: memref<16x32xbf16, #tpu.memory_space<vmem>>, %arg8: memref<16x32xf32, #tpu.memory_space<vmem>>) attributes {dimension_semantics = [#tpu.dimension_semantics<parallel>, #tpu.dimension_semantics<arbitrary>], iteration_bounds = array<i64: 6, 1>, scalar_prefetch = 1 : i64, scratch_operands = 1 : i64, tpu.core_type = #tpu.core_type<tc>, window_params = [{transform_indices = @transform_0, window_bounds = array<i64: 16, 32>}, {transform_indices = @transform_1, window_bounds = array<i64: 1, 2, 32, 64>}, {transform_indices = @transform_2, window_bounds = array<i64: 1, 64, 32>}, {transform_indices = @transform_3, window_bounds = array<i64: 16, 1>}, {transform_indices = @transform_4, window_bounds = array<i64: 16, 32>}]} {
    %c0_i32 = arith.constant 0 : i32
    %0 = arith.cmpi eq, %arg1, %c0_i32 : i32
    %1 = arith.extui %0 : i1 to i32
    %c0_i32_0 = arith.constant 0 : i32
    %2 = arith.cmpi ne, %1, %c0_i32_0 : i32
    scf.if %2 {
      %cst_21 = arith.constant 0.000000e+00 : f32
      %27 = vector.broadcast %cst_21 : f32 to vector<16x32xf32>
      %c0_22 = arith.constant 0 : index
      %c0_23 = arith.constant 0 : index
      %28 = vector.load %arg8[%c0_22, %c0_23] : memref<16x32xf32, #tpu.memory_space<vmem>>, vector<16x32xf32>
      tpu.vector_store %arg8[%c0_22, %c0_23], %27 {strides = array<i32>} : memref<16x32xf32, #tpu.memory_space<vmem>>, vector<16x32xf32>,
    } else {
    }
    %c0 = arith.constant 0 : index
    %c0_1 = arith.constant 0 : index
    %3 = vector.load %arg3[%c0, %c0_1] : memref<16x32xbf16, #tpu.memory_space<vmem>>, vector<16x32xbf16>
    %c0_2 = arith.constant 0 : index
    %c0_3 = arith.constant 0 : index
    %c0_4 = arith.constant 0 : index
    %c0_5 = arith.constant 0 : index
    %4 = vector.load %arg4[%c0_2, %c0_3, %c0_4, %c0_5] : memref<1x2x32x64xbf16, #tpu.memory_space<vmem>>, vector<1x1x32x64xbf16>
    %5 = vector.shape_cast %4 : vector<1x1x32x64xbf16> to vector<32x64xbf16>
    %cst = arith.constant dense<0.000000e+00> : vector<16x64xf32>
    %6 = tpu.matmul %3, %5, %cst {dimension_numbers = #tpu.dot_dimension_numbers<[1], [0], [0], [1], [0, 0, 1, 1], [], []>} : vector<16x32xbf16>, vector<32x64xbf16>, vector<16x64xf32> -> vector<16x64xf32>
    %c0_6 = arith.constant 0 : index
    %c1 = arith.constant 1 : index
    %c0_7 = arith.constant 0 : index
    %c0_8 = arith.constant 0 : index
    %7 = vector.load %arg4[%c0_6, %c1, %c0_7, %c0_8] : memref<1x2x32x64xbf16, #tpu.memory_space<vmem>>, vector<1x1x32x64xbf16>
    %8 = vector.shape_cast %7 : vector<1x1x32x64xbf16> to vector<32x64xbf16>
    %cst_9 = arith.constant dense<0.000000e+00> : vector<16x64xf32>
    %9 = tpu.matmul %3, %8, %cst_9 {dimension_numbers = #tpu.dot_dimension_numbers<[1], [0], [0], [1], [0, 0, 1, 1], [], []>} : vector<16x32xbf16>, vector<32x64xbf16>, vector<16x64xf32> -> vector<16x64xf32>
    %10 = arith.negf %6 : vector<16x64xf32>
    %11 = math.exp %10 : vector<16x64xf32>
    %cst_10 = arith.constant 1.000000e+00 : f32
    %12 = vector.broadcast %cst_10 : f32 to vector<16x64xf32>
    %13 = arith.addf %12, %11 : vector<16x64xf32>
    %14 = arith.divf %12, %13 : vector<16x64xf32>
    %15 = arith.mulf %6, %14 : vector<16x64xf32>
    %16 = arith.mulf %15, %9 : vector<16x64xf32>
    %c0_11 = arith.constant 0 : index
    %c0_12 = arith.constant 0 : index
    %17 = vector.load %arg8[%c0_11, %c0_12] : memref<16x32xf32, #tpu.memory_space<vmem>>, vector<16x32xf32>
    %18 = arith.truncf %16 : vector<16x64xf32> to vector<16x64xbf16>
    %c0_13 = arith.constant 0 : index
    %c0_14 = arith.constant 0 : index
    %c0_15 = arith.constant 0 : index
    %19 = vector.load %arg5[%c0_13, %c0_14, %c0_15] : memref<1x64x32xbf16, #tpu.memory_space<vmem>>, vector<1x64x32xbf16>
    %20 = vector.shape_cast %19 : vector<1x64x32xbf16> to vector<64x32xbf16>
    %cst_16 = arith.constant dense<0.000000e+00> : vector<16x32xf32>
    %21 = tpu.matmul %18, %20, %cst_16 {dimension_numbers = #tpu.dot_dimension_numbers<[1], [0], [0], [1], [0, 0, 1, 1], [], []>} : vector<16x64xbf16>, vector<64x32xbf16>, vector<16x32xf32> -> vector<16x32xf32>
    %22 = arith.addf %17, %21 : vector<16x32xf32>
    %c0_17 = arith.constant 0 : index
    %c0_18 = arith.constant 0 : index
    %23 = vector.load %arg8[%c0_17, %c0_18] : memref<16x32xf32, #tpu.memory_space<vmem>>, vector<16x32xf32>
    tpu.vector_store %arg8[%c0_17, %c0_18], %22 {strides = array<i32>} : memref<16x32xf32, #tpu.memory_space<vmem>>, vector<16x32xf32>,
    %c0_i32_19 = arith.constant 0 : i32
    %24 = arith.cmpi eq, %arg1, %c0_i32_19 : i32
    %25 = arith.extui %24 : i1 to i32
    %c0_i32_20 = arith.constant 0 : i32
    %26 = arith.cmpi ne, %25, %c0_i32_20 : i32
    scf.if %26 {
      %c0_21 = arith.constant 0 : index
      %c0_22 = arith.constant 0 : index
      %27 = vector.load %arg8[%c0_21, %c0_22] : memref<16x32xf32, #tpu.memory_space<vmem>>, vector<16x32xf32>
      %c0_23 = arith.constant 0 : index
      %c0_24 = arith.constant 0 : index
      %28 = vector.load %arg6[%c0_23, %c0_24] : memref<16x1xf32, #tpu.memory_space<vmem>>, vector<16x1xf32>
      %29 = vector.broadcast %28 : vector<16x1xf32> to vector<16x32xf32>
      %30 = arith.mulf %27, %29 : vector<16x32xf32>
      %31 = arith.truncf %30 : vector<16x32xf32> to vector<16x32xbf16>
      %c0_25 = arith.constant 0 : index
      %c0_26 = arith.constant 0 : index
      %32 = vector.load %arg7[%c0_25, %c0_26] : memref<16x32xbf16, #tpu.memory_space<vmem>>, vector<16x32xbf16>
      tpu.vector_store %arg7[%c0_25, %c0_26], %31 {strides = array<i32>} : memref<16x32xbf16, #tpu.memory_space<vmem>>, vector<16x32xbf16>,
    } else {
    }
    return
  }
  func.func @transform_0(%arg0: i32, %arg1: i32, %arg2: memref<6xi32, #tpu.memory_space<smem>>) -> (i32, i32) {
    %c0_i32 = arith.constant 0 : i32
    %c0_i32_0 = arith.constant 0 : i32
    return %arg0, %c0_i32 : i32, i32
  }
  func.func @transform_1(%arg0: i32, %arg1: i32, %arg2: memref<6xi32, #tpu.memory_space<smem>>) -> (i32, i32, i32, i32) {
    %0 = arith.index_cast %arg0 : i32 to index
    %1 = memref.load %arg2[%0] : memref<6xi32, #tpu.memory_space<smem>>
    %c0_i32 = arith.constant 0 : i32
    %c0_i32_0 = arith.constant 0 : i32
    %c0_i32_1 = arith.constant 0 : i32
    return %1, %c0_i32, %c0_i32_0, %arg1 : i32, i32, i32, i32
  }
  func.func @transform_2(%arg0: i32, %arg1: i32, %arg2: memref<6xi32, #tpu.memory_space<smem>>) -> (i32, i32, i32) {
    %0 = arith.index_cast %arg0 : i32 to index
    %1 = memref.load %arg2[%0] : memref<6xi32, #tpu.memory_space<smem>>
    %c0_i32 = arith.constant 0 : i32
    %c0_i32_0 = arith.constant 0 : i32
    return %1, %arg1, %c0_i32 : i32, i32, i32
  }
  func.func @transform_3(%arg0: i32, %arg1: i32, %arg2: memref<6xi32, #tpu.memory_space<smem>>) -> (i32, i32) {
    %c0_i32 = arith.constant 0 : i32
    %c0_i32_0 = arith.constant 0 : i32
    return %arg0, %c0_i32 : i32, i32
  }
  func.func @transform_4(%arg0: i32, %arg1: i32, %arg2: memref<6xi32, #tpu.memory_space<smem>>) -> (i32, i32) {
    %c0_i32 = arith.constant 0 : i32
    %c0_i32_0 = arith.constant 0 : i32
    return %arg0, %c0_i32 : i32, i32
  }
}

module attributes {stable_mosaic.version = 11 : i64} {
  func.func @_add_layernorm_kernel(%arg0: i32, %arg1: memref<16x32xbf16, #tpu.memory_space<vmem>>, %arg2: memref<16x32xbf16, #tpu.memory_space<vmem>>, %arg3: memref<1x32xbf16, #tpu.memory_space<vmem>>, %arg4: memref<1x32xbf16, #tpu.memory_space<vmem>>, %arg5: memref<16x32xbf16, #tpu.memory_space<vmem>>, %arg6: memref<16x32xbf16, #tpu.memory_space<vmem>>) attributes {dimension_semantics = [#tpu.dimension_semantics<parallel>], iteration_bounds = array<i64: 1>, scalar_prefetch = 0 : i64, scratch_operands = 0 : i64, tpu.core_type = #tpu.core_type<tc>, window_params = [{transform_indices = @transform_0, window_bounds = array<i64: 16, 32>}, {transform_indices = @transform_1, window_bounds = array<i64: 16, 32>}, {pipeline_mode = #tpu.pipeline_mode<synchronous>, transform_indices = @transform_2, window_bounds = array<i64: 1, 32>}, {pipeline_mode = #tpu.pipeline_mode<synchronous>, transform_indices = @transform_3, window_bounds = array<i64: 1, 32>}, {transform_indices = @transform_4, window_bounds = array<i64: 16, 32>}, {transform_indices = @transform_5, window_bounds = array<i64: 16, 32>}]} {
    %c0 = arith.constant 0 : index
    %c0_0 = arith.constant 0 : index
    %0 = vector.load %arg1[%c0, %c0_0] : memref<16x32xbf16, #tpu.memory_space<vmem>>, vector<16x32xbf16>
    %1 = arith.extf %0 : vector<16x32xbf16> to vector<16x32xf32>
    %c0_1 = arith.constant 0 : index
    %c0_2 = arith.constant 0 : index
    %2 = vector.load %arg2[%c0_1, %c0_2] : memref<16x32xbf16, #tpu.memory_space<vmem>>, vector<16x32xbf16>
    %3 = arith.extf %2 : vector<16x32xbf16> to vector<16x32xf32>
    %4 = arith.addf %1, %3 : vector<16x32xf32>
    %cst = arith.constant dense<0.000000e+00> : vector<16xf32>
    %5 = vector.multi_reduction <add>, %4, %cst [1] : vector<16x32xf32> to vector<16xf32>
    %6 = vector.shape_cast %5 : vector<16xf32> to vector<16x1xf32>
    %cst_3 = arith.constant 3.200000e+01 : f32
    %7 = vector.broadcast %cst_3 : f32 to vector<16x1xf32>
    %8 = arith.divf %6, %7 : vector<16x1xf32>
    %9 = vector.broadcast %8 : vector<16x1xf32> to vector<16x32xf32>
    %10 = arith.subf %4, %9 : vector<16x32xf32>
    %11 = arith.mulf %10, %10 : vector<16x32xf32>
    %cst_4 = arith.constant dense<0.000000e+00> : vector<16xf32>
    %12 = vector.multi_reduction <add>, %11, %cst_4 [1] : vector<16x32xf32> to vector<16xf32>
    %13 = vector.shape_cast %12 : vector<16xf32> to vector<16x1xf32>
    %cst_5 = arith.constant 3.200000e+01 : f32
    %14 = vector.broadcast %cst_5 : f32 to vector<16x1xf32>
    %15 = arith.divf %13, %14 : vector<16x1xf32>
    %cst_6 = arith.constant 9.99999974E-6 : f32
    %16 = vector.broadcast %cst_6 : f32 to vector<16x1xf32>
    %17 = arith.addf %15, %16 : vector<16x1xf32>
    %18 = math.rsqrt %17 : vector<16x1xf32>
    %19 = vector.broadcast %18 : vector<16x1xf32> to vector<16x32xf32>
    %20 = arith.mulf %10, %19 : vector<16x32xf32>
    %c0_7 = arith.constant 0 : index
    %c0_8 = arith.constant 0 : index
    %21 = vector.load %arg3[%c0_7, %c0_8] : memref<1x32xbf16, #tpu.memory_space<vmem>>, vector<1x32xbf16>
    %22 = arith.extf %21 : vector<1x32xbf16> to vector<1x32xf32>
    %23 = vector.broadcast %22 : vector<1x32xf32> to vector<16x32xf32>
    %24 = arith.mulf %20, %23 : vector<16x32xf32>
    %c0_9 = arith.constant 0 : index
    %c0_10 = arith.constant 0 : index
    %25 = vector.load %arg4[%c0_9, %c0_10] : memref<1x32xbf16, #tpu.memory_space<vmem>>, vector<1x32xbf16>
    %26 = arith.extf %25 : vector<1x32xbf16> to vector<1x32xf32>
    %27 = vector.broadcast %26 : vector<1x32xf32> to vector<16x32xf32>
    %28 = arith.addf %24, %27 : vector<16x32xf32>
    %29 = arith.truncf %28 : vector<16x32xf32> to vector<16x32xbf16>
    %c0_11 = arith.constant 0 : index
    %c0_12 = arith.constant 0 : index
    %30 = vector.load %arg5[%c0_11, %c0_12] : memref<16x32xbf16, #tpu.memory_space<vmem>>, vector<16x32xbf16>
    tpu.vector_store %arg5[%c0_11, %c0_12], %29 {strides = array<i32>} : memref<16x32xbf16, #tpu.memory_space<vmem>>, vector<16x32xbf16>,
    %31 = arith.truncf %4 : vector<16x32xf32> to vector<16x32xbf16>
    %c0_13 = arith.constant 0 : index
    %c0_14 = arith.constant 0 : index
    %32 = vector.load %arg6[%c0_13, %c0_14] : memref<16x32xbf16, #tpu.memory_space<vmem>>, vector<16x32xbf16>
    tpu.vector_store %arg6[%c0_13, %c0_14], %31 {strides = array<i32>} : memref<16x32xbf16, #tpu.memory_space<vmem>>, vector<16x32xbf16>,
    return
  }
  func.func @transform_0(%arg0: i32) -> (i32, i32) {
    %c0_i32 = arith.constant 0 : i32
    %c0_i32_0 = arith.constant 0 : i32
    return %arg0, %c0_i32 : i32, i32
  }
  func.func @transform_1(%arg0: i32) -> (i32, i32) {
    %c0_i32 = arith.constant 0 : i32
    %c0_i32_0 = arith.constant 0 : i32
    return %arg0, %c0_i32 : i32, i32
  }
  func.func @transform_2(%arg0: i32) -> (i32, i32) {
    %c0_i32 = arith.constant 0 : i32
    %c0_i32_0 = arith.constant 0 : i32
    %c0_i32_1 = arith.constant 0 : i32
    return %c0_i32, %c0_i32_0 : i32, i32
  }
  func.func @transform_3(%arg0: i32) -> (i32, i32) {
    %c0_i32 = arith.constant 0 : i32
    %c0_i32_0 = arith.constant 0 : i32
    %c0_i32_1 = arith.constant 0 : i32
    return %c0_i32, %c0_i32_0 : i32, i32
  }
  func.func @transform_4(%arg0: i32) -> (i32, i32) {
    %c0_i32 = arith.constant 0 : i32
    %c0_i32_0 = arith.constant 0 : i32
    return %arg0, %c0_i32 : i32, i32
  }
  func.func @transform_5(%arg0: i32) -> (i32, i32) {
    %c0_i32 = arith.constant 0 : i32
    %c0_i32_0 = arith.constant 0 : i32
    return %arg0, %c0_i32 : i32, i32
  }
}

module attributes {stable_mosaic.version = 11 : i64} {
  func.func @_add_layernorm_kernel(%arg0: i32, %arg1: memref<16x32xbf16, #tpu.memory_space<vmem>>, %arg2: memref<16x32xbf16, #tpu.memory_space<vmem>>, %arg3: memref<1x32xbf16, #tpu.memory_space<vmem>>, %arg4: memref<1x32xbf16, #tpu.memory_space<vmem>>, %arg5: memref<16x32xbf16, #tpu.memory_space<vmem>>, %arg6: memref<16x32xbf16, #tpu.memory_space<vmem>>) attributes {dimension_semantics = [#tpu.dimension_semantics<parallel>], iteration_bounds = array<i64: 1>, scalar_prefetch = 0 : i64, scratch_operands = 0 : i64, tpu.core_type = #tpu.core_type<tc>, window_params = [{transform_indices = @transform_0, window_bounds = array<i64: 16, 32>}, {transform_indices = @transform_1, window_bounds = array<i64: 16, 32>}, {pipeline_mode = #tpu.pipeline_mode<synchronous>, transform_indices = @transform_2, window_bounds = array<i64: 1, 32>}, {pipeline_mode = #tpu.pipeline_mode<synchronous>, transform_indices = @transform_3, window_bounds = array<i64: 1, 32>}, {transform_indices = @transform_4, window_bounds = array<i64: 16, 32>}, {transform_indices = @transform_5, window_bounds = array<i64: 16, 32>}]} {
    %c0 = arith.constant 0 : index
    %c0_0 = arith.constant 0 : index
    %0 = vector.load %arg1[%c0, %c0_0] : memref<16x32xbf16, #tpu.memory_space<vmem>>, vector<16x32xbf16>
    %1 = arith.extf %0 : vector<16x32xbf16> to vector<16x32xf32>
    %c0_1 = arith.constant 0 : index
    %c0_2 = arith.constant 0 : index
    %2 = vector.load %arg2[%c0_1, %c0_2] : memref<16x32xbf16, #tpu.memory_space<vmem>>, vector<16x32xbf16>
    %3 = arith.extf %2 : vector<16x32xbf16> to vector<16x32xf32>
    %4 = arith.addf %1, %3 : vector<16x32xf32>
    %cst = arith.constant dense<0.000000e+00> : vector<16xf32>
    %5 = vector.multi_reduction <add>, %4, %cst [1] : vector<16x32xf32> to vector<16xf32>
    %6 = vector.shape_cast %5 : vector<16xf32> to vector<16x1xf32>
    %cst_3 = arith.constant 3.200000e+01 : f32
    %7 = vector.broadcast %cst_3 : f32 to vector<16x1xf32>
    %8 = arith.divf %6, %7 : vector<16x1xf32>
    %9 = vector.broadcast %8 : vector<16x1xf32> to vector<16x32xf32>
    %10 = arith.subf %4, %9 : vector<16x32xf32>
    %11 = arith.mulf %10, %10 : vector<16x32xf32>
    %cst_4 = arith.constant dense<0.000000e+00> : vector<16xf32>
    %12 = vector.multi_reduction <add>, %11, %cst_4 [1] : vector<16x32xf32> to vector<16xf32>
    %13 = vector.shape_cast %12 : vector<16xf32> to vector<16x1xf32>
    %cst_5 = arith.constant 3.200000e+01 : f32
    %14 = vector.broadcast %cst_5 : f32 to vector<16x1xf32>
    %15 = arith.divf %13, %14 : vector<16x1xf32>
    %cst_6 = arith.constant 9.99999974E-6 : f32
    %16 = vector.broadcast %cst_6 : f32 to vector<16x1xf32>
    %17 = arith.addf %15, %16 : vector<16x1xf32>
    %18 = math.rsqrt %17 : vector<16x1xf32>
    %19 = vector.broadcast %18 : vector<16x1xf32> to vector<16x32xf32>
    %20 = arith.mulf %10, %19 : vector<16x32xf32>
    %c0_7 = arith.constant 0 : index
    %c0_8 = arith.constant 0 : index
    %21 = vector.load %arg3[%c0_7, %c0_8] : memref<1x32xbf16, #tpu.memory_space<vmem>>, vector<1x32xbf16>
    %22 = arith.extf %21 : vector<1x32xbf16> to vector<1x32xf32>
    %23 = vector.broadcast %22 : vector<1x32xf32> to vector<16x32xf32>
    %24 = arith.mulf %20, %23 : vector<16x32xf32>
    %c0_9 = arith.constant 0 : index
    %c0_10 = arith.constant 0 : index
    %25 = vector.load %arg4[%c0_9, %c0_10] : memref<1x32xbf16, #tpu.memory_space<vmem>>, vector<1x32xbf16>
    %26 = arith.extf %25 : vector<1x32xbf16> to vector<1x32xf32>
    %27 = vector.broadcast %26 : vector<1x32xf32> to vector<16x32xf32>
    %28 = arith.addf %24, %27 : vector<16x32xf32>
    %29 = arith.truncf %28 : vector<16x32xf32> to vector<16x32xbf16>
    %c0_11 = arith.constant 0 : index
    %c0_12 = arith.constant 0 : index
    %30 = vector.load %arg5[%c0_11, %c0_12] : memref<16x32xbf16, #tpu.memory_space<vmem>>, vector<16x32xbf16>
    tpu.vector_store %arg5[%c0_11, %c0_12], %29 {strides = array<i32>} : memref<16x32xbf16, #tpu.memory_space<vmem>>, vector<16x32xbf16>,
    %31 = arith.truncf %4 : vector<16x32xf32> to vector<16x32xbf16>
    %c0_13 = arith.constant 0 : index
    %c0_14 = arith.constant 0 : index
    %32 = vector.load %arg6[%c0_13, %c0_14] : memref<16x32xbf16, #tpu.memory_space<vmem>>, vector<16x32xbf16>
    tpu.vector_store %arg6[%c0_13, %c0_14], %31 {strides = array<i32>} : memref<16x32xbf16, #tpu.memory_space<vmem>>, vector<16x32xbf16>,
    return
  }
  func.func @transform_0(%arg0: i32) -> (i32, i32) {
    %c0_i32 = arith.constant 0 : i32
    %c0_i32_0 = arith.constant 0 : i32
    return %arg0, %c0_i32 : i32, i32
  }
  func.func @transform_1(%arg0: i32) -> (i32, i32) {
    %c0_i32 = arith.constant 0 : i32
    %c0_i32_0 = arith.constant 0 : i32
    return %arg0, %c0_i32 : i32, i32
  }
  func.func @transform_2(%arg0: i32) -> (i32, i32) {
    %c0_i32 = arith.constant 0 : i32
    %c0_i32_0 = arith.constant 0 : i32
    %c0_i32_1 = arith.constant 0 : i32
    return %c0_i32, %c0_i32_0 : i32, i32
  }
  func.func @transform_3(%arg0: i32) -> (i32, i32) {
    %c0_i32 = arith.constant 0 : i32
    %c0_i32_0 = arith.constant 0 : i32
    %c0_i32_1 = arith.constant 0 : i32
    return %c0_i32, %c0_i32_0 : i32, i32
  }
  func.func @transform_4(%arg0: i32) -> (i32, i32) {
    %c0_i32 = arith.constant 0 : i32
    %c0_i32_0 = arith.constant 0 : i32
    return %arg0, %c0_i32 : i32, i32
  }
  func.func @transform_5(%arg0: i32) -> (i32, i32) {
    %c0_i32 = arith.constant 0 : i32
    %c0_i32_0 = arith.constant 0 : i32
    return %arg0, %c0_i32 : i32, i32
  }
}

</mosaic_0001>

<bundles_post_ra>
// kernel: _lambda_.13
= control target key start
LH: loop header
LB: loop body
LE: loop exit
PB: predicated region body
PF: predicated region fallthrough
CT: control target
= control target key end

     0   :  { %vm18_vm0 = vcmask 261120   ;;  %v48_v17 = vlaneseq  ;;  %vm70_vm1 = vcmask 257024   ;;  %s128_s0 = inlined_call_operand.vmem [shape: bf16[16,32], index: 0, kind: input, shape index: {}]   ;;  %s129_s1 = inlined_call_operand.vmem [shape: bf16[1,32], index: 1, kind: input, shape index: {}]   ;;  %s130_s2 = inlined_call_operand.vmem [shape: bf16[1,32], index: 2, kind: input, shape index: {}]   ;;  %s131_s3 = inlined_call_operand.vmem [shape: bf16[16,32], index: 3, kind: output, shape index: {}]  }
   0x1   :  { %v82_v0 = vld [vmem:[%s128_s0] sm:$0xff]  }
   0x2   :  { %v83_v1 = vunpack.c.l.bf16 %v82_v0  ;;  %v84_v2 = vunpack.c.h.bf16 %v82_v0  ;;  %v49_v21 = vshrl.u32 %v48_v17, 7  ;;  %v46_v22 = vld [vmem:[%s129_s1] sm:$0x1] }
   0x3   :  { %v54_v24 = vld [vmem:[%s130_s2] sm:$0x1]  ;;  %v47_v25 = vunpack.c.l.bf16 %v46_v22 }
   0x4   :  { %v19_v3 = vsel %vm18_vm0, %v83_v1, 0.0  ;;  %v22_v4 = vsel %vm18_vm0, %v84_v2, 0.0  ;;  %v50_v26 = vsub.s32 0, %v49_v21  ;;  %v55_v27 = vunpack.c.l.bf16 %v54_v24 }
   0x5   :  { %20 = vadd.xlane.f32.xlu0 %v19_v3 }
   0x6   :  { %v51_v28 = vrot.slane %v47_v25, %v50_v26  ;;  %v59_v30 = vrot.slane %v55_v27, %v50_v26 }
   0x9   :  { %23 = vadd.xlane.f32.xlu0 %v22_v4 }
  0x92   :  { %v21_v5 = vpop.xlane.xlu0 %20 }
  0x93   :  { %v26_v6 = vmul.f32 0.03125, %v21_v5 }
  0x95   :  { %v28_v7 = vsub.f32 %v83_v1, %v26_v6 }
  0x96   :  { %v24_v8 = vpop.xlane.xlu0 %23 }
  0x97   :  { %v27_v9 = vmul.f32 0.03125, %v24_v8  ;;  %v30_v10 = vmul.f32 %v28_v7, %v28_v7 }
  0x99   :  { %v29_v11 = vsub.f32 %v84_v2, %v27_v9  ;;  %v32_v12 = vsel %vm18_vm0, %v30_v10, 0.0 }
  0x9a   :  { %33 = vadd.xlane.f32.xlu1 %v32_v12 }
  0x9b   :  { %v31_v13 = vmul.f32 %v29_v11, %v29_v11 }
  0x9d   :  { %v35_v14 = vsel %vm18_vm0, %v31_v13, 0.0 }
  0x9e   :  { %36 = vadd.xlane.f32.xlu1 %v35_v14 }
 0x127   :  { %v34_v15 = vpop.xlane.xlu1 %33 }
 0x128   :  { %v38_v16 = vmul.f32 0.03125, %v34_v15 }
 0x12a   :  { %v40_v18 = vadd.f32 1e-05, %v38_v16 }
 0x12b   :  { %v37_v19 = vpop.xlane.xlu1 %36 }
 0x12c   :  { %85 = vrsqrt.f32 %v40_v18  ;;  %v39_v20 = vmul.f32 0.03125, %v37_v19 }
 0x12e   :  { %v41_v23 = vadd.f32 1e-05, %v39_v20 }
 0x130   :  { %87 = vrsqrt.f32 %v41_v23 }
 0x136   :  { %v86_v29 = vpop.eup %85 }
 0x137   :  { %v44_v31 = vmul.f32 %v86_v29, %v28_v7 }
 0x139   :  { %v52_v32 = vmul.f32 %v51_v28, %v44_v31 }
 0x13a   :  { %v88_v33 = vpop.eup %87 }
 0x13b   :  { %v60_v34 = vadd.f32 %v59_v30, %v52_v32  ;;  %v45_v35 = vmul.f32 %v88_v33, %v29_v11 }
 0x13d   :  { %v79_v36 = vpack.c.bf16 %v60_v34, %v60_v34  ;;  %v53_v37 = vmul.f32 %v51_v28, %v45_v35 }
 0x13f   :  { %71 = vst.msk [vmem:[%s131_s3] sm:$0xf] %vm70_vm1, %v79_v36  ;;  %v61_v38 = vadd.f32 %v59_v30, %v53_v37 }
 0x141   :  { %v80_v39 = vpack.c.bf16 %v61_v38, %v61_v38 }
 0x143   :  { %72 = vst.msk [vmem:[%s131_s3 + $0x4] sm:$0xf] %vm70_vm1, %v80_v39 }

// kernel: _lambda_.14
= control target key start
LH: loop header
LB: loop body
LE: loop exit
PB: predicated region body
PF: predicated region fallthrough
CT: control target
= control target key end

     0   :  { %vm19_vm0 = vcmask 523264   ;;  %v149_v0 = vmov 0.0   ;;  %vm150_vm1 = vmmov 0   ;;  %vm47_vm2 = vcmask 261120   ;;  %s193_s1 = inlined_call_operand.vmem [shape: bf16[32,64], index: 1, kind: input, shape index: {}]   ;;  %s194_s0 = inlined_call_operand.vmem [shape: bf16[16,32], index: 0, kind: input, shape index: {}]   ;;  %s195_s2 = inlined_call_operand.vmem [shape: bf16[1,64], index: 2, kind: input, shape index: {}]   ;;  %s196_s3 = inlined_call_operand.vmem [shape: bf16[16,64], index: 3, kind: output, shape index: {}]  }
   0x1   :  { %136 = vmatprep.subr.bf16.mxu0 %v149_v0  ;;  %v146_v1 = vld [vmem:[%s193_s1] sm:$0xff]   ;;  %140 = vmatprep.mubr.msk.bf16.mxu0 %vm150_vm1, %v149_v0  ;;  %20 = vst.msk [vmem:[#allocation2] sm:$0xff] %vm19_vm0, %v149_v0  ;;  %21 = vst.msk [vmem:[#allocation2 + $0x8] sm:$0xff] %vm19_vm0, %v149_v0  ;;  %v147_v2 = vld [vmem:[%s193_s1 + $0x8] sm:$0xff]   ;;  %v104_v4 = vlaneseq  ;;  %vm118_vm3 = vcmask 519168  }
   0x2   :  { %137 = vmatpush3.bf16.msra.mxu0 %v146_v1  ;;  %v148_v3 = vld [vmem:[%s194_s0] sm:$0xff]  }
   0x3   :  { %138 = vmatprep.subr.bf16.mxu0 %v149_v0  ;;  %v105_v6 = vshrl.u32 %v104_v4, 7  ;;  %v102_v8 = vld [vmem:[%s195_s2] sm:$0x1] }
   0x4   :  { %v103_v13 = vunpack.c.l.bf16 %v102_v8 }
   0x5   :  { %v106_v14 = vsub.s32 0, %v105_v6 }
   0x6   :  { %139 = vmatpush3.bf16.msra.mxu0 %v147_v2 }
   0x7   :  { %v107_v17 = vrot.slane %v103_v13, %v106_v14 }
   0x8   :  { %v22_v5 = vld [vmem:[#allocation2] sm:$0xff]  ;;  %v23_v9 = vld [vmem:[#allocation2 + $0x8] sm:$0xff] }
   0x9   :  { %141 = vmatmul.mubr.msk.bf16.vlgmr.msra.gmra.mrb[0].mxu0 %vm47_vm2, %v148_v3 }
  0xdc   :  { %v85_v7 = vpop.f32.mrb[0].mxu0 }
  0xdd   :  { %v92_v10 = vadd.f32 %v85_v7, %v22_v5  ;;  %v142_v11 = vpop.f32.mrb[1].mxu0 }
  0xde   :  { %v88_v12 = vpop.f32.mrb[2].mxu0 }
  0xdf   :  { %95 = vst.msk [vmem:[#allocation2] sm:$0xff] %vm19_vm0, %v92_v10  ;;  %v93_v15 = vadd.f32 %v88_v12, %v23_v9  ;;  %v143_v16 = vpop.f32.mrb[3].mxu0 }
  0xe1   :  { %96 = vst.msk [vmem:[#allocation2 + $0x8] sm:$0xff] %vm19_vm0, %v93_v15 }
  0xe6   :  { %v100_v18 = vld [vmem:[#allocation2] sm:$0xff] }
  0xe7   :  { %v108_v19 = vadd.f32 %v107_v17, %v100_v18 }
  0xe8   :  { %v101_v20 = vld [vmem:[#allocation2 + $0x8] sm:$0xff] }
  0xe9   :  { %v131_v21 = vpack.c.bf16 %v108_v19, %v108_v19  ;;  %v109_v22 = vadd.f32 %v107_v17, %v101_v20 }
  0xeb   :  { %119 = vst.msk [vmem:[%s196_s3] sm:$0xf] %vm118_vm3, %v131_v21  ;;  %v132_v23 = vpack.c.bf16 %v109_v22, %v109_v22 }
  0xed   :  { %120 = vst.msk [vmem:[%s196_s3 + $0x4] sm:$0xf] %vm118_vm3, %v132_v23 }

// kernel: _lambda_.15
= control target key start
LH: loop header
LB: loop body
LE: loop exit
PB: predicated region body
PF: predicated region fallthrough
CT: control target
= control target key end

     0   :  { %s1056_s22 = smov 0   ;;  %s1058_s23 = smov 0   ;;  %s1168_s0 = inlined_call_operand.<no memory space> [shape: s32[1], index: 0, kind: input, shape index: {}, may-alias: {0,1}]   ;;  %s1169_s1 = inlined_call_operand.<no memory space> [shape: s32[1], index: 1, kind: input, shape index: {}, may-alias: {0,1}]   ;;  %s1170_s2 = inlined_call_operand.vmem [shape: bf16[2,2,2,8,8], index: 2, kind: input, shape index: {}]   ;;  %s1171_s3 = inlined_call_operand.vmem [shape: bf16[2,2,8,8], index: 3, kind: input, shape index: {}]   ;;  %s1172_s4 = inlined_call_operand.vmem [shape: bf16[2,2,8,8], index: 4, kind: input, shape index: {}]   ;;  %s1173_s5 = inlined_call_operand.vmem [shape: bf16[2,2,2,8,8], index: 5, kind: output, shape index: {}]  }
   0x1   :  { %10 = sst [smem:[#allocation6]] %s1168_s0  ;;  %s1060_s24 = smov 0  }
   0x2   :  { %11 = sst [smem:[#allocation7]] %s1169_s1  ;;  %s1062_s25 = smov 0  }
   0x3   :  { %s1064_s26 = smov 0  }
   0x4 LB: > { %s32_s0 = sadd.s32 1, %s1000_s24  ;;  %s36_s1 = sadd.s32 1, %s1004_s25  ;;  %s1008_s26 = sphi %s1064_s26, %s17_s26   ;;  %s1004_s25 = sphi %s1062_s25, %s1181_s25   ;;  %s1000_s24 = sphi %s1060_s24, %s1180_s24   ;;  %s996_s23 = sphi %s1058_s23, %s1179_s23   ;;  %s992_s22 = sphi %s1056_s22, %s1178_s22  }
   0x5   : > { %p34_p0 = scmp.ge.s32.totalorder %s32_s0, 2  ;;  %p851_p1 = scmp.ge.s32.totalorder %s1008_s26, 1 }
   0x6   : > { %p229_p2 = scmp.lt.s32.totalorder %s1008_s26, 5 }
   0x7   : > { %s1183_s0 = smov (%p34_p0, %s32_s0), 0  ;;  %s1185_s1 = smov (!%p34_p0, %s36_s1), %s1004_s25 }
   0x8   : > { %1174 = sst [smem:[#allocation8_spill]] %s1183_s0  ;;  %p230_p3 = pnand %p851_p1, %p229_p2 }
   0x9   : > { %p38_p4 = scmp.ge.s32.totalorder %s1185_s1, 2  ;;  %s1086_s27 = sld [smem:[#allocation6]] (!%p230_p3) }
   0xa   : > { %233 = sbr.rel (%p230_p3) target bundleno = 1357 (0x54d), region = 32  ;;  %p294_p5 = scmp.lt.s32.totalorder (!%p230_p3), %s996_s23, 1 }
   0xb   : > { %s1187_s1 = smov (%p38_p4, %s1185_s1), 0  ;;  %p296_p6 = scmp.lt.s32.totalorder (!%p230_p3), %s992_s22, 1 }
   0xc   : > { %1175 = sst [smem:[#allocation9_spill]] %s1187_s1  ;;  %s1088_s28 = sld [smem:[#allocation7]] (!%p230_p3) }
   0xf   : > { %p298_p7 = scmp.lt.s32.totalorder (!%p230_p3), %s1086_s27, 0 }
  0x11   : > { %s1189_s23 = smov (!%p294_p5, %s996_s23), 1  ;;  %s1191_s22 = smov (!%p296_p6, %s992_s22), 1 }
  0x12   : > { %s853_s29 = sshll.u32 %s1189_s23, 2  ;;  %s855_s30 = sshll.u32 %s1189_s23, 1 }
  0x13   : > { %s852_s6 = sshll.u32 %s1191_s22, 1  ;;  %p312_p8 = scmp.lt.s32.totalorder %s1088_s28, 0 }
  0x14   : > { %s299_s7 = scalar_select %p298_p7, %s1086_s27, 0 }
  0x15   : > { %s313_s8 = scalar_select %p312_p8, %s1088_s28, 0 }
  0x16   : > { %s301_s9 = sadd.s32 %s852_s6, %s299_s7  ;;  %p862_p9 = scmp.ne.s32.totalorder %s1088_s28, 0 }
  0x17   : > { %s303_s10 = sadd.s32 %s853_s29, %s301_s9  ;;  %s314_s11 = sadd.s32 %s313_s8, %s1191_s22  ;;  %vm354_vm0 = vcmask (!%p862_p9), 7168   ;;  %vm359_vm1 = vcmask (!%p862_p9), 64512   ;;  %v1010_v0 = vmov (!%p862_p9), -1e+30   ;;  %v1011_v1 = vmov (!%p862_p9), 0.0  }
  0x18   : > { %s854_s12 = sshll.u32 %s303_s10, 2  ;;  %s316_s13 = sadd.s32 %s855_s30, %s314_s11  ;;  %355 = vst.msk [vmem:[#allocation2] sm:$0xff] (!%p862_p9), %vm354_vm0, %v1010_v0  ;;  %356 = vst.msk [vmem:[#allocation2 + $0x8] sm:$0xff] (!%p862_p9), %vm354_vm0, %v1010_v0 }
  0x19   : > { %s305_s16 = scalar_lea.vmem %s1170_s2, %s854_s12  ;;  %s856_s17 = sshll.u32 %s316_s13, 2  ;;  %357 = vst.msk [vmem:[#allocation3] sm:$0xff] (!%p862_p9), %vm354_vm0, %v1011_v1  ;;  %358 = vst.msk [vmem:[#allocation3 + $0x8] sm:$0xff] (!%p862_p9), %vm354_vm0, %v1011_v1 }
  0x1a   : > { %s318_s20 = scalar_lea.vmem %s1171_s3, %s856_s17  ;;  %s1103_s1 = scalar_lea.vmem %s1172_s4, %s856_s17  ;;  %360 = vst.msk [vmem:[#allocation4] sm:$0xff] (!%p862_p9), %vm359_vm1, %v1011_v1  ;;  %361 = vst.msk [vmem:[#allocation4 + $0x8] sm:$0xff] (!%p862_p9), %vm359_vm1, %v1011_v1 }
  0x1b   : > { %s1108_s22 = scalar_lea.vmem %s1173_s5, %s854_s12  ;;  %353 = sbr.rel (%p862_p9) target bundleno = 34 (0x22), region = 36 }
  0x22 PF: > { %v364_v2 = vld [vmem:[%s318_s20] sm:$0xf]  ;;  %vm370_vm2 = vcmask 64512   ;;  %v1012_v3 = vmov 0.0   ;;  %vm1013_vm3 = vmmov 0   ;;  %p865_p10 = scmp.ne.s32.totalorder %s1088_s28, %s1086_s27 }
  0x23   : > { %877 = vmatprep.subr.bf16.mxu0 %v1012_v3  ;;  %v375_v4 = vsel %vm370_vm2, %v364_v2, 0  ;;  %879 = vmatprep.mubr.msk.bf16.mxu0 %vm1013_vm3, %v1012_v3  ;;  %v945_v5 = vld [vmem:[%s305_s16] sm:$0xff]   ;;  %v422_v10 = vlaneseq (!%p865_p10)  ;;  %v1014_v17 = vmov (!%p865_p10), 0   ;;  %v429_v18 = vld [vmem:[#allocation2] sm:$0xff] (!%p865_p10)  ;;  %vm473_vm5 = vcmask (!%p865_p10), 7168   ;;  %v430_v21 = vld [vmem:[#allocation2 + $0x8] sm:$0xff] (!%p865_p10) }
  0x24   : > { %878 = vmatpush3.bf16.xpose.msra.mxu0 %v375_v4  ;;  %946 = vset.pattern.permute.xlu1 (!%p865_p10), %v1014_v17  ;;  %v491_v26 = vld [vmem:[%s1103_s1] sm:$0xf] (!%p865_p10)  ;;  %vm495_vm6 = vcmask (!%p865_p10), 1043456   ;;  %v1015_v27 = vmov (!%p865_p10), 0.0   ;;  %vm1016_vm7 = vmmov (!%p865_p10), 0   ;;  %v461_v44 = vld [vmem:[#allocation3] sm:$0xff] (!%p865_p10) }
  0x25   : > { %v423_v11 = vshrl.u32 (!%p865_p10), %v422_v10, 7  ;;  %v425_v12 = vand.u32 (!%p865_p10), 127, %v422_v10  ;;  %947 = vset.pattern.permute.xlu0 (!%p865_p10), %v1014_v17  ;;  %883 = vmatprep.subr.bf16.mxu0 (!%p865_p10), %v1015_v27  ;;  %v497_v28 = vsel (!%p865_p10), %vm495_vm6, %v491_v26, 0  ;;  %v462_v47 = vld [vmem:[#allocation3 + $0x8] sm:$0xff] (!%p865_p10)  ;;  %v476_v54 = vld [vmem:[#allocation4] sm:$0xff] (!%p865_p10)  ;;  %v477_v56 = vld [vmem:[#allocation4 + $0x8] sm:$0xff] (!%p865_p10) }
  0x26   : > { %vm566_vm8 = vcmask (!%p865_p10), 60416  }
  0x27   : > { %vm426_vm4 = vcmp.le.s32.totalorder (!%p865_p10), %v425_v12, %v423_v11 }
  0x2b   : > { %880 = vmatmul.mubr.msk.bf16.vlgmr.msra.gmra.mrb[0].mxu0 %vm370_vm2, %v945_v5 }
  0x2c   : > { %885 = vmatprep.mubr.msk.bf16.mxu0 (!%p865_p10), %vm1016_vm7, %v1015_v27  ;;  %884 = vmatpush3.bf16.msra.mxu0 (!%p865_p10), %v497_v28 }
  0xfb   : > { %421 = sbr.rel (%p865_p10) target bundleno = 845 (0x34d), region = 40 }
  0xfe   : > { %v1113_v6 = vpop.f32.mrb[0].mxu0 }
  0xff   : > { %v881_v7 = vpop.f32.mrb[1].mxu0  ;;  %v427_v13 = vsel (!%p865_p10), %vm426_vm4, %v1113_v6, -1e+30 }
 0x100   : > { %v1115_v8 = vpop.f32.mrb[2].mxu0  ;;  %v431_v15 = vsel (!%p865_p10), %vm370_vm2, %v427_v13, -inf }
 0x101   : > { %v882_v9 = vpop.f32.mrb[3].mxu0  ;;  %v428_v14 = vsel (!%p865_p10), %vm426_vm4, %v1115_v8, -1e+30  ;;  %432 = vmax.xlane.f32.xlu0 (!%p865_p10), %v431_v15 }
 0x102   : > { %v434_v16 = vsel %vm370_vm2, %v428_v14, -inf }
 0x105   : > { %435 = vmax.xlane.f32.xlu0 %v434_v16 }
 0x18e   : > { %v433_v19 = vpop.xlane.xlu0 %432 }
 0x18f   : > { %v437_v20 = vmax.f32 %v429_v18, %v433_v19 }
 0x191   : > { %v439_v22 = vsub.f32 %v429_v18, %v437_v20  ;;  %544 = vst.msk [vmem:[#allocation2] sm:$0xff] %vm473_vm5, %v437_v20  ;;  %447 = vperm.xlu1 %946, %v437_v20  }
 0x192   : > { %v436_v23 = vpop.xlane.xlu0 %435 }
 0x193   : > { %v438_v24 = vmax.f32 %v430_v21, %v436_v23  ;;  %v441_v41 = vmul.f32 1.442695, %v439_v22 }
 0x195   : > { %v440_v25 = vsub.f32 %v430_v21, %v438_v24  ;;  %545 = vst.msk [vmem:[#allocation2 + $0x8] sm:$0xff] %vm473_vm5, %v438_v24  ;;  %452 = vperm.xlu1 %946, %v438_v24  }
 0x197   : > { %v443_v40 = vmul.f32 1.442695, %v440_v25 }
 0x210   : > { %v448_v29 = vpop.permute.xlu1 %447 }
 0x211   : > { %v455_v30 = vsub.f32 %v427_v13, %v448_v29 }
 0x213   : > { %v457_v31 = vmul.f32 1.442695, %v455_v30 }
 0x214   : > { %v453_v32 = vpop.permute.xlu1 %452 }
 0x215   : > { %948 = vpow2.f32 %v457_v31  ;;  %v456_v33 = vsub.f32 %v428_v14, %v453_v32 }
 0x217   : > { %v459_v34 = vmul.f32 1.442695, %v456_v33 }
 0x219   : > { %950 = vpow2.f32 %v459_v34 }
 0x21a   : > { %952 = vpow2.f32 %v443_v40 }
 0x21b   : > { %954 = vpow2.f32 %v441_v41 }
 0x21f   : > { %v949_v35 = vpop.eup %948 }
 0x220   : > { %v465_v36 = vsel %vm370_vm2, %v949_v35, 0.0 }
 0x221   : > { %466 = vadd.xlane.f32.xlu0 %v465_v36 }
 0x223   : > { %v951_v37 = vpop.eup %950 }
 0x224   : > { %v468_v38 = vsel %vm370_vm2, %v951_v37, 0.0  ;;  %v490_v39 = vpack.c.bf16 %v951_v37, %v949_v35  ;;  %v953_v42 = vpop.eup %952 }
 0x225   : > { %469 = vadd.xlane.f32.xlu1 %v468_v38  ;;  %v955_v43 = vpop.eup %954  ;;  %v464_v49 = vmul.f32 %v953_v42, %v462_v47 }
 0x226   : > { %886 = vmatmul.mubr.msk.bf16.vlgmr.msra.gmra.mrb[0].mxu0 %vm370_vm2, %v490_v39  ;;  %v463_v45 = vmul.f32 %v955_v43, %v461_v44 }
 0x236   : > { %485 = vperm.xlu1 %946, %v953_v42  }
 0x237   : > { %480 = vperm.xlu0 %947, %v955_v43  }
 0x2ae   : > { %v467_v46 = vpop.xlane.xlu0 %466 }
 0x2af   : > { %v471_v48 = vadd.f32 %v467_v46, %v463_v45 }
 0x2b1   : > { %474 = vst.msk [vmem:[#allocation3] sm:$0xff] %vm473_vm5, %v471_v48 }
 0x2b2   : > { %v470_v50 = vpop.xlane.xlu1 %469 }
 0x2b3   : > { %v472_v51 = vadd.f32 %v470_v50, %v464_v49 }
 0x2b5   : > { %475 = vst.msk [vmem:[#allocation3 + $0x8] sm:$0xff] %vm473_vm5, %v472_v51 }
 0x2b6   : > { %v481_v55 = vpop.permute.xlu0 %480  ;;  %v486_v57 = vpop.permute.xlu1 %485 }
 0x2b7   : > { %v488_v58 = vmul.f32 %v481_v55, %v476_v54  ;;  %v489_v60 = vmul.f32 %v486_v57, %v477_v56 }
 0x2b8   : > { %v548_v52 = vld [vmem:[#allocation3] sm:$0xff] }
 0x2b9   : > { %552 = vperm.xlu0 %947, %v548_v52  }
 0x2bc   : > { %v549_v53 = vld [vmem:[#allocation3 + $0x8] sm:$0xff] }
 0x2bd   : > { %557 = vperm.xlu0 %947, %v549_v53  }
 0x2f9   : > { %v533_v59 = vpop.f32.mrb[0].mxu0 }
 0x2fa   : > { %v540_v61 = vadd.f32 %v533_v59, %v488_v58  ;;  %v887_v62 = vpop.f32.mrb[1].mxu0 }
 0x2fb   : > { %v536_v63 = vpop.f32.mrb[2].mxu0 }
 0x2fc   : > { %542 = vst.msk [vmem:[#allocation4] sm:$0xff] %vm370_vm2, %v540_v61  ;;  %v541_v0 = vadd.f32 %v536_v63, %v489_v60  ;;  %v888_v1 = vpop.f32.mrb[3].mxu0 }
 0x2fe   : > { %543 = vst.msk [vmem:[#allocation4 + $0x8] sm:$0xff] %vm370_vm2, %v541_v0 }
 0x303   : > { %v546_v5 = vld [vmem:[#allocation4] sm:$0xff] }
 0x305   : > { %v547_v11 = vld [vmem:[#allocation4 + $0x8] sm:$0xff] }
 0x338   : > { %v553_v2 = vpop.permute.xlu0 %552 }
 0x339   : > { %956 = vrcp.f32 %v553_v2 }
 0x33c   : > { %v558_v3 = vpop.permute.xlu0 %557 }
 0x33d   : > { %958 = vrcp.f32 %v558_v3 }
 0x343   : > { %v957_v4 = vpop.eup %956 }
 0x344   : > { %v561_v7 = vmul.f32 %v957_v4, %v546_v5 }
 0x346   : > { %v564_v9 = vpack.c.bf16 %v561_v7, %v561_v7 }
 0x347   : > { %v959_v10 = vpop.eup %958 }
 0x348   : > { %567 = vst.msk [vmem:[%s1108_s22] sm:$0xf] %vm566_vm8, %v564_v9  ;;  %v563_v12 = vmul.f32 %v959_v10, %v547_v11 }
 0x34a   : > { %v565_v13 = vpack.c.bf16 %v563_v12, %v563_v12 }
 0x34c   : > { %568 = vst.msk [vmem:[%s1108_s22 + $0x4] sm:$0xf] %vm566_vm8, %v565_v13 }
 0x34d PF: > { %p867_p11 = scmp.eq.s32.totalorder %s1088_s28, %s1086_s27 }
 0x34e   : > { %v575_v14 = vsel (!%p867_p11), %vm370_vm2, %v1113_v6, -inf  ;;  %v578_v15 = vsel (!%p867_p11), %vm370_vm2, %v1115_v8, -inf  ;;  %v1017_v16 = vmov (!%p867_p11), 0   ;;  %v573_v17 = vld [vmem:[#allocation2] sm:$0xff] (!%p867_p11)  ;;  %vm617_vm9 = vcmask (!%p867_p11), 7168   ;;  %v574_v20 = vld [vmem:[#allocation2 + $0x8] sm:$0xff] (!%p867_p11) }
 0x34f   : > { %572 = sbr.rel (%p867_p11) target bundleno = 1357 (0x54d), region = 44  ;;  %576 = vmax.xlane.f32.xlu0 (!%p867_p11), %v575_v14  ;;  %960 = vset.pattern.permute.xlu1 (!%p867_p11), %v1017_v16  ;;  %v635_v25 = vld [vmem:[%s1103_s1] sm:$0xf] (!%p867_p11)  ;;  %vm639_vm10 = vcmask (!%p867_p11), 1043456   ;;  %v1018_v26 = vmov (!%p867_p11), 0.0   ;;  %vm1019_vm11 = vmmov (!%p867_p11), 0  }
 0x350   : > { %961 = vset.pattern.permute.xlu0 (!%p867_p11), %v1017_v16  ;;  %889 = vmatprep.subr.bf16.mxu0 (!%p867_p11), %v1018_v26  ;;  %v641_v27 = vsel (!%p867_p11), %vm639_vm10, %v635_v25, 0  ;;  %v606_v44 = vld [vmem:[#allocation3 + $0x8] sm:$0xff] (!%p867_p11)  ;;  %v620_v49 = vld [vmem:[#allocation4] sm:$0xff] (!%p867_p11)  ;;  %v621_v51 = vld [vmem:[#allocation4 + $0x8] sm:$0xff] (!%p867_p11) }
 0x351   : > { %891 = vmatprep.mubr.msk.bf16.mxu0 (!%p867_p11), %vm1019_vm11, %v1018_v26  ;;  %890 = vmatpush3.bf16.msra.mxu0 (!%p867_p11), %v641_v27 }
 0x353   : > { %579 = vmax.xlane.f32.xlu0 (!%p867_p11), %v578_v15 }
 0x3dc   : > { %v577_v18 = vpop.xlane.xlu0 %576 }
 0x3dd   : > { %v581_v19 = vmax.f32 %v573_v17, %v577_v18 }
 0x3df   : > { %v583_v21 = vsub.f32 %v573_v17, %v581_v19  ;;  %688 = vst.msk [vmem:[#allocation2] sm:$0xff] %vm617_vm9, %v581_v19  ;;  %591 = vperm.xlu1 %960, %v581_v19  }
 0x3e0   : > { %v580_v22 = vpop.xlane.xlu0 %579 }
 0x3e1   : > { %v582_v23 = vmax.f32 %v574_v20, %v580_v22 }
 0x3e3   : > { %v584_v24 = vsub.f32 %v574_v20, %v582_v23  ;;  %689 = vst.msk [vmem:[#allocation2 + $0x8] sm:$0xff] %vm617_vm9, %v582_v23  ;;  %596 = vperm.xlu1 %960, %v582_v23  }
 0x3e5   : > { %v587_v39 = vmul.f32 1.442695, %v584_v24 }
 0x45e   : > { %v592_v28 = vpop.permute.xlu1 %591 }
 0x45f   : > { %v599_v29 = vsub.f32 %v1113_v6, %v592_v28  ;;  %v585_v6 = vmul.f32 1.442695, %v583_v21 }
 0x461   : > { %v601_v30 = vmul.f32 1.442695, %v599_v29 }
 0x462   : > { %v597_v31 = vpop.permute.xlu1 %596 }
 0x463   : > { %962 = vpow2.f32 %v601_v30  ;;  %v600_v32 = vsub.f32 %v1115_v8, %v597_v31  ;;  %v605_v8 = vld [vmem:[#allocation3] sm:$0xff] }
 0x465   : > { %v603_v33 = vmul.f32 1.442695, %v600_v32 }
 0x467   : > { %964 = vpow2.f32 %v603_v33 }
 0x468   : > { %966 = vpow2.f32 %v587_v39 }
 0x469   : > { %968 = vpow2.f32 %v585_v6 }
 0x46d   : > { %v963_v34 = vpop.eup %962 }
 0x46e   : > { %v609_v35 = vsel %vm370_vm2, %v963_v34, 0.0 }
 0x46f   : > { %610 = vadd.xlane.f32.xlu0 %v609_v35 }
 0x471   : > { %v965_v36 = vpop.eup %964 }
 0x472   : > { %v612_v37 = vsel %vm370_vm2, %v965_v36, 0.0  ;;  %v634_v38 = vpack.c.bf16 %v965_v36, %v963_v34  ;;  %v967_v40 = vpop.eup %966 }
 0x473   : > { %613 = vadd.xlane.f32.xlu1 %v612_v37  ;;  %v969_v41 = vpop.eup %968  ;;  %v608_v46 = vmul.f32 %v967_v40, %v606_v44 }
 0x474   : > { %892 = vmatmul.mubr.msk.bf16.vlgmr.msra.gmra.mrb[0].mxu0 %vm370_vm2, %v634_v38  ;;  %v607_v42 = vmul.f32 %v969_v41, %v605_v8 }
 0x484   : > { %629 = vperm.xlu1 %960, %v967_v40  }
 0x485   : > { %624 = vperm.xlu0 %961, %v969_v41  }
 0x4fc   : > { %v611_v43 = vpop.xlane.xlu0 %610 }
 0x4fd   : > { %v615_v45 = vadd.f32 %v611_v43, %v607_v42 }
 0x4ff   : > { %618 = vst.msk [vmem:[#allocation3] sm:$0xff] %vm617_vm9, %v615_v45 }
 0x500   : > { %v614_v47 = vpop.xlane.xlu1 %613 }
 0x501   : > { %v616_v48 = vadd.f32 %v614_v47, %v608_v46 }
 0x503   : > { %619 = vst.msk [vmem:[#allocation3 + $0x8] sm:$0xff] %vm617_vm9, %v616_v48 }
 0x504   : > { %v625_v50 = vpop.permute.xlu0 %624  ;;  %v630_v52 = vpop.permute.xlu1 %629 }
 0x505   : > { %v632_v53 = vmul.f32 %v625_v50, %v620_v49  ;;  %v633_v55 = vmul.f32 %v630_v52, %v621_v51 }
 0x547   : > { %v677_v54 = vpop.f32.mrb[0].mxu0 }
 0x548   : > { %v684_v56 = vadd.f32 %v677_v54, %v632_v53  ;;  %v893_v57 = vpop.f32.mrb[1].mxu0 }
 0x549   : > { %v680_v58 = vpop.f32.mrb[2].mxu0 }
 0x54a   : > { %686 = vst.msk [vmem:[#allocation4] sm:$0xff] %vm370_vm2, %v684_v56  ;;  %v685_v59 = vadd.f32 %v680_v58, %v633_v55  ;;  %v894_v60 = vpop.f32.mrb[3].mxu0 }
 0x54c   : > { %687 = vst.msk [vmem:[#allocation4 + $0x8] sm:$0xff] %vm370_vm2, %v685_v59 }
 0x54d PF: > { %s17_s26 = sadd.s32 1, %s1008_s26   ;;  %s1176_s0 = sld [smem:[#allocation8_spill]] }
 0x54e   : > { %p14_p12 = scmp.ge.s32.totalorder %s17_s26, 6   ;;  %s1177_s1 = sld [smem:[#allocation9_spill]] }
 0x54f   : > { %s1178_s22 = smov %s1000_s24  ;;  %s1179_s23 = smov %s1004_s25 }
 0x550   :  { %16 = sbr.rel (!%p14_p12) target bundleno = 4 (0x4), region = 80 }
 0x553   : > { %s1180_s24 = smov %s1176_s0 }
 0x554   : > { %s1181_s25 = smov %s1177_s1 }

// kernel: custom-call.8
= control target key start
LH: loop header
LB: loop body
LE: loop exit
PB: predicated region body
PF: predicated region fallthrough
CT: control target
= control target key end

     0   :  { %s6_s0 = inlined_call_operand.vmem [shape: u32[6], index: 0, kind: output, shape index: {}]  }

// kernel: _lambda_.16
= control target key start
LH: loop header
LB: loop body
LE: loop exit
PB: predicated region body
PF: predicated region fallthrough
CT: control target
= control target key end

     0   :  { %vm19_vm0 = vcmask 261120   ;;  %v148_v0 = vmov 0.0   ;;  %vm149_vm1 = vmmov 0   ;;  %v103_v4 = vlaneseq  ;;  %s193_s1 = inlined_call_operand.vmem [shape: bf16[32,32], index: 1, kind: input, shape index: {}]   ;;  %s194_s0 = inlined_call_operand.vmem [shape: bf16[16,32], index: 0, kind: input, shape index: {}]   ;;  %s195_s2 = inlined_call_operand.vmem [shape: bf16[1,32], index: 2, kind: input, shape index: {}]   ;;  %s196_s3 = inlined_call_operand.vmem [shape: bf16[16,32], index: 3, kind: output, shape index: {}]  }
   0x1   :  { %135 = vmatprep.subr.bf16.mxu0 %v148_v0  ;;  %v145_v1 = vld [vmem:[%s193_s1] sm:$0xff]   ;;  %139 = vmatprep.mubr.msk.bf16.mxu0 %vm149_vm1, %v148_v0  ;;  %20 = vst.msk [vmem:[#allocation2] sm:$0xff] %vm19_vm0, %v148_v0  ;;  %21 = vst.msk [vmem:[#allocation2 + $0x8] sm:$0xff] %vm19_vm0, %v148_v0  ;;  %v146_v2 = vld [vmem:[%s193_s1 + $0x8] sm:$0xff]   ;;  %vm117_vm2 = vcmask 257024  }
   0x2   :  { %136 = vmatpush3.bf16.msra.mxu0 %v145_v1  ;;  %v147_v3 = vld [vmem:[%s194_s0] sm:$0xff]   ;;  %v104_v6 = vshrl.u32 %v103_v4, 7 }
   0x3   :  { %137 = vmatprep.subr.bf16.mxu0 %v148_v0  ;;  %v101_v8 = vld [vmem:[%s195_s2] sm:$0x1] }
   0x4   :  { %v102_v13 = vunpack.c.l.bf16 %v101_v8  ;;  %v105_v14 = vsub.s32 0, %v104_v6 }
   0x6   :  { %138 = vmatpush3.bf16.msra.mxu0 %v146_v2  ;;  %v106_v17 = vrot.slane %v102_v13, %v105_v14 }
   0x8   :  { %v22_v5 = vld [vmem:[#allocation2] sm:$0xff]  ;;  %v23_v9 = vld [vmem:[#allocation2 + $0x8] sm:$0xff] }
   0x9   :  { %140 = vmatmul.mubr.msk.bf16.vlgmr.msra.gmra.mrb[0].mxu0 %vm19_vm0, %v147_v3 }
  0xdc   :  { %v85_v7 = vpop.f32.mrb[0].mxu0 }
  0xdd   :  { %v92_v10 = vadd.f32 %v85_v7, %v22_v5  ;;  %v141_v11 = vpop.f32.mrb[1].mxu0 }
  0xde   :  { %v88_v12 = vpop.f32.mrb[2].mxu0 }
  0xdf   :  { %94 = vst.msk [vmem:[#allocation2] sm:$0xff] %vm19_vm0, %v92_v10  ;;  %v93_v15 = vadd.f32 %v88_v12, %v23_v9  ;;  %v142_v16 = vpop.f32.mrb[3].mxu0 }
  0xe1   :  { %95 = vst.msk [vmem:[#allocation2 + $0x8] sm:$0xff] %vm19_vm0, %v93_v15 }
  0xe6   :  { %v99_v18 = vld [vmem:[#allocation2] sm:$0xff] }
  0xe7   :  { %v107_v19 = vadd.f32 %v106_v17, %v99_v18 }
  0xe8   :  { %v100_v20 = vld [vmem:[#allocation2 + $0x8] sm:$0xff] }
  0xe9   :  { %v130_v21 = vpack.c.bf16 %v107_v19, %v107_v19  ;;  %v108_v22 = vadd.f32 %v106_v17, %v100_v20 }
  0xeb   :  { %118 = vst.msk [vmem:[%s196_s3] sm:$0xf] %vm117_vm2, %v130_v21  ;;  %v131_v23 = vpack.c.bf16 %v108_v22, %v108_v22 }
  0xed   :  { %119 = vst.msk [vmem:[%s196_s3 + $0x4] sm:$0xf] %vm117_vm2, %v131_v23 }

// kernel: _lambda_.17
= control target key start
LH: loop header
LB: loop body
LE: loop exit
PB: predicated region body
PF: predicated region fallthrough
CT: control target
= control target key end

     0   :  { %vm34_vm0 = vcmask 261120   ;;  %vm86_vm1 = vcmask 257024   ;;  %v211_v23 = vmov 0.0   ;;  %vm212_vm2 = vmmov 0   ;;  %s298_s0 = inlined_call_operand.vmem [shape: bf16[16,32], index: 0, kind: input, shape index: {}]   ;;  %s299_s1 = inlined_call_operand.vmem [shape: bf16[16,32], index: 1, kind: input, shape index: {}]   ;;  %s300_s6 = inlined_call_operand.vmem [shape: bf16[16,32], index: 6, kind: output, shape index: {1}]   ;;  %s301_s4 = inlined_call_operand.vmem [shape: bf16[32,128], index: 4, kind: input, shape index: {}]   ;;  %s302_s2 = inlined_call_operand.vmem [shape: bf16[1,32], index: 2, kind: input, shape index: {}]   ;;  %s303_s3 = inlined_call_operand.vmem [shape: bf16[1,32], index: 3, kind: input, shape index: {}]   ;;  %s304_s5 = inlined_call_operand.vmem [shape: bf16[16,32], index: 5, kind: output, shape index: {0}]   ;;  %s305_s7 = inlined_call_operand.vmem [shape: f32[16,128], index: 7, kind: output, shape index: {2}]  }
   0x1   :  { %v185_v0 = vld [vmem:[%s298_s0] sm:$0xff]   ;;  %195 = vmatprep.subr.bf16.mxu0 %v211_v23  ;;  %v206_v24 = vld [vmem:[%s301_s4 + $0x8] sm:$0xff]   ;;  %199 = vmatprep.mubr.msk.bf16.mxu0 %vm212_vm2, %v211_v23  ;;  %v64_v27 = vlaneseq }
   0x2   :  { %v189_v1 = vld [vmem:[%s299_s1] sm:$0xff]   ;;  %v186_v2 = vunpack.c.l.bf16 %v185_v0  ;;  %v187_v4 = vunpack.c.h.bf16 %v185_v0 }
   0x3   :  { %v190_v3 = vunpack.c.l.bf16 %v189_v1  ;;  %v191_v5 = vunpack.c.h.bf16 %v189_v1  ;;  %v205_v22 = vld [vmem:[%s301_s4] sm:$0xff]   ;;  %v65_v31 = vshrl.u32 %v64_v27, 7 }
   0x4   :  { %196 = vmatpush3.bf16.msra.mxu0 %v205_v22  ;;  %v62_v33 = vld [vmem:[%s302_s2] sm:$0x1] }
   0x5   :  { %v32_v6 = vadd.f32 %v190_v3, %v186_v2  ;;  %v33_v7 = vadd.f32 %v191_v5, %v187_v4  ;;  %197 = vmatprep.subr.bf16.mxu0 %v211_v23  ;;  %v70_v34 = vld [vmem:[%s303_s3] sm:$0x1]  ;;  %v63_v35 = vunpack.c.l.bf16 %v62_v33  ;;  %v66_v36 = vsub.s32 0, %v65_v31 }
   0x6   :  { %v71_v37 = vunpack.c.l.bf16 %v70_v34 }
   0x7   :  { %v35_v8 = vsel %vm34_vm0, %v32_v6, 0.0  ;;  %v182_v9 = vpack.c.bf16 %v32_v6, %v32_v6  ;;  %v183_v10 = vpack.c.bf16 %v33_v7, %v33_v7  ;;  %v38_v11 = vsel %vm34_vm0, %v33_v7, 0.0 }
   0x8   :  { %36 = vadd.xlane.f32.xlu0 %v35_v8  ;;  %198 = vmatpush3.bf16.msra.mxu0 %v206_v24  ;;  %v67_v38 = vrot.slane %v63_v35, %v66_v36  ;;  %v75_v41 = vrot.slane %v71_v37, %v66_v36 }
   0x9   :  { %97 = vst.msk [vmem:[%s300_s6] sm:$0xf] %vm86_vm1, %v182_v9  ;;  %98 = vst.msk [vmem:[%s300_s6 + $0x4] sm:$0xf] %vm86_vm1, %v183_v10 }
   0xc   :  { %39 = vadd.xlane.f32.xlu0 %v38_v11 }
  0x95   :  { %v37_v12 = vpop.xlane.xlu0 %36 }
  0x96   :  { %v42_v13 = vmul.f32 0.03125, %v37_v12 }
  0x98   :  { %v44_v14 = vsub.f32 %v32_v6, %v42_v13 }
  0x99   :  { %v40_v15 = vpop.xlane.xlu0 %39 }
  0x9a   :  { %v43_v16 = vmul.f32 0.03125, %v40_v15  ;;  %v46_v17 = vmul.f32 %v44_v14, %v44_v14 }
  0x9c   :  { %v45_v18 = vsub.f32 %v33_v7, %v43_v16  ;;  %v48_v19 = vsel %vm34_vm0, %v46_v17, 0.0 }
  0x9d   :  { %49 = vadd.xlane.f32.xlu1 %v48_v19 }
  0x9e   :  { %v47_v20 = vmul.f32 %v45_v18, %v45_v18 }
  0xa0   :  { %v51_v21 = vsel %vm34_vm0, %v47_v20, 0.0 }
  0xa1   :  { %52 = vadd.xlane.f32.xlu1 %v51_v21 }
 0x12a   :  { %v50_v25 = vpop.xlane.xlu1 %49 }
 0x12b   :  { %v54_v26 = vmul.f32 0.03125, %v50_v25 }
 0x12d   :  { %v56_v28 = vadd.f32 1e-05, %v54_v26 }
 0x12e   :  { %v53_v29 = vpop.xlane.xlu1 %52 }
 0x12f   :  { %207 = vrsqrt.f32 %v56_v28  ;;  %v55_v30 = vmul.f32 0.03125, %v53_v29 }
 0x131   :  { %v57_v32 = vadd.f32 1e-05, %v55_v30 }
 0x133   :  { %209 = vrsqrt.f32 %v57_v32 }
 0x139   :  { %v208_v39 = vpop.eup %207 }
 0x13a   :  { %v60_v40 = vmul.f32 %v208_v39, %v44_v14 }
 0x13c   :  { %v68_v42 = vmul.f32 %v67_v38, %v60_v40 }
 0x13d   :  { %v210_v43 = vpop.eup %209 }
 0x13e   :  { %v61_v44 = vmul.f32 %v210_v43, %v45_v18  ;;  %v76_v45 = vadd.f32 %v75_v41, %v68_v42 }
 0x140   :  { %v69_v46 = vmul.f32 %v67_v38, %v61_v44  ;;  %v180_v47 = vpack.c.bf16 %v76_v45, %v76_v45 }
 0x142   :  { %v77_v48 = vadd.f32 %v75_v41, %v69_v46  ;;  %87 = vst.msk [vmem:[%s304_s5] sm:$0xf] %vm86_vm1, %v180_v47 }
 0x144   :  { %v78_v49 = vpack.c.bf16 %v77_v48, %v76_v45  ;;  %v181_v50 = vpack.c.bf16 %v77_v48, %v77_v48 }
 0x146   :  { %88 = vst.msk [vmem:[%s304_s5 + $0x4] sm:$0xf] %vm86_vm1, %v181_v50  ;;  %200 = vmatmul.mubr.msk.bf16.vlgmr.msra.gmra.mrb[0].mxu0 %vm34_vm0, %v78_v49 }
 0x219   :  { %v152_v51 = vpop.f32.mrb[0].mxu0 }
 0x21a   :  { %159 = vst [vmem:[%s305_s7] sm:$0xff] %v152_v51  ;;  %v201_v52 = vpop.f32.mrb[1].mxu0 }
 0x21b   :  { %v155_v53 = vpop.f32.mrb[2].mxu0 }
 0x21c   :  { %160 = vst [vmem:[%s305_s7 + $0x8] sm:$0xff] %v155_v53  ;;  %v202_v54 = vpop.f32.mrb[3].mxu0 }

// kernel: _lambda_.18
= control target key start
LH: loop header
LB: loop body
LE: loop exit
PB: predicated region body
PF: predicated region fallthrough
CT: control target
= control target key end

     0   :  { %s965_s0 = inlined_call_operand.vmem [shape: s32[6], index: 0, kind: input, shape index: {}]   ;;  %s966_s1 = inlined_call_operand.vmem [shape: bf16[96,32], index: 1, kind: input, shape index: {}]   ;;  %s967_s2 = inlined_call_operand.vmem [shape: bf16[4,2,32,64], index: 2, kind: input, shape index: {}]   ;;  %s968_s3 = inlined_call_operand.vmem [shape: bf16[4,64,32], index: 3, kind: input, shape index: {}]   ;;  %s969_s4 = inlined_call_operand.vmem [shape: f32[96,1], index: 4, kind: input, shape index: {}]   ;;  %s970_s5 = inlined_call_operand.vmem [shape: bf16[96,32], index: 5, kind: output, shape index: {}]  }
   0x1   :  { %s10_s20 = sshll.u32 %s965_s0, 4  ;;  %s11_s20 = int_to_ptr.vmem [resolvable:$true] %s10_s20 }
   0x2   :  { %s826_s21 = scalar_lea.vmem %s11_s20, 16  ;;  %p831_p1 = scmp.lt.s32.totalorder %s11_s20, %s11_s20 }
   0x3   :  { %p827_p0 = scmp.ne.s32.totalorder %s11_s20, %s826_s21  ;;  %p832_p2 = scmp.lt.s32.totalorder %s826_s21, %s826_s21 }
   0x5   :  { %p833_p3 = por %p832_p2, %p831_p1 }
   0x7   :  { %p834_p4 = pnand %p833_p3, %p827_p0 }
   0x9   :  { %837 = shalt.err (!%p834_p4)  }
   0xa   :  { %s864_s22 = smov [#allocation4]  }
   0xb   :  { %13 = dma.vmem_to_smem %s11_s20, 16, %s864_s22, [#allocation3] }
   0xc   :  { %850 = dma.done.wait [#allocation3], 16 }
   0xd   :  { %851 = vsyncadd [#allocation3], 4294967280 }
   0xe   :  { %15 = sfence }
   0xf   :  { %s901_s23 = smov 0   ;;  %s903_s24 = smov 0  }
  0x10   :  { %s905_s25 = smov 0  }
  0x11 LB: > { %s33_s0 = sadd.s32 1, %s858_s24  ;;  %p704_p5 = scmp.ge.s32.totalorder %s862_s25, 1  ;;  %s862_s25 = sphi %s905_s25, %s21_s25   ;;  %s858_s24 = sphi %s903_s24, %s972_s24   ;;  %s854_s23 = sphi %s901_s23, %s971_s23  }
  0x12   : > { %p35_p6 = scmp.ge.s32.totalorder %s33_s0, 6  ;;  %p233_p7 = scmp.lt.s32.totalorder %s862_s25, 7 }
  0x14   : > { %s974_s0 = smov (%p35_p6, %s33_s0), 0  ;;  %p234_p8 = pnand %p704_p5, %p233_p7 }
  0x15   : > { %s289_s26 = sld [smem:[#allocation4 + %s854_s23]] (!%p234_p8)  ;;  %s705_s27 = sshll.u32 (!%p234_p8), %s854_s23, 1  ;;  %vm328_vm0 = vcmask (!%p234_p8), 261120   ;;  %v865_v0 = vmov (!%p234_p8), 0.0   ;;  %vm866_vm1 = vmmov (!%p234_p8), 0   ;;  %v867_v10 = vmov (!%p234_p8), 0  }
  0x16   : > { %237 = sbr.rel (%p234_p8) target bundleno = 515 (0x203), region = 36  ;;  %752 = vmatprep.subr.bf16.mxu1 (!%p234_p8), %v865_v0  ;;  %756 = vmatprep.mubr.msk.bf16.mxu1 (!%p234_p8), %vm866_vm1, %v865_v0  ;;  %p284_p9 = scmp.lt.s32.totalorder (!%p234_p8), %s705_s27, 11  ;;  %329 = vst.msk [vmem:[#allocation2] sm:$0xff] (!%p234_p8), %vm328_vm0, %v865_v0  ;;  %330 = vst.msk [vmem:[#allocation2 + $0x8] sm:$0xff] (!%p234_p8), %vm328_vm0, %v865_v0  ;;  %vm508_vm2 = vcmask (!%p234_p8), 523264   ;;  %vm584_vm3 = vcmask (!%p234_p8), 257024  }
  0x17   : > { %768 = vmatprep.subr.bf16.mxu0 (!%p234_p8), %v865_v0  ;;  %776 = vmatprep.mubr.msk.bf16.mxu0 (!%p234_p8), %vm866_vm1, %v865_v0  ;;  %s299_s11 = sld [smem:[#allocation4 + %s854_s23]] (!%p234_p8) }
  0x18   : > { %808 = vset.pattern.permute.xlu0 (!%p234_p8), %v867_v10 }
  0x1b   : > { %p290_p10 = scmp.lt.s32.totalorder (!%p234_p8), %s289_s26, 3 }
  0x1d   : > { %s976_s27 = smov (!%p284_p9, %s705_s27), 11  ;;  %s978_s26 = smov (!%p290_p10, %s289_s26), 3  ;;  %v473_v34 = vld [vmem:[#allocation2] sm:$0xff]  ;;  %v474_v36 = vld [vmem:[#allocation2 + $0x8] sm:$0xff] }
  0x1e   : > { %s706_s28 = sshll.u32 %s976_s27, 2  ;;  %s737_s7 = sshll.u32 %s978_s26, 5 }
  0x1f   : > { %s287_s6 = scalar_lea.vmem %s966_s1, %s706_s28  ;;  %s297_s10 = scalar_lea.vmem %s967_s2, %s737_s7 }
  0x20   : > { %v809_v1 = vld [vmem:[%s297_s10] sm:$0xff]   ;;  %v810_v2 = vld [vmem:[%s297_s10 + $0x8] sm:$0xff]   ;;  %v812_v4 = vld [vmem:[%s297_s10 + $0x10] sm:$0xff]   ;;  %p301_p11 = scmp.lt.s32.totalorder %s299_s11, 3  ;;  %s712_s16 = sshll.u32 %s976_s27, 3 }
  0x21   : > { %753 = vmatpush3.bf16.msra.mxu1 %v809_v1  ;;  %v811_v3 = vld [vmem:[%s287_s6] sm:$0xff]   ;;  %v813_v5 = vld [vmem:[%s297_s10 + $0x18] sm:$0xff]   ;;  %s315_s19 = scalar_lea.vmem %s969_s4, %s712_s16  ;;  %s321_s22 = scalar_lea.vmem %s970_s5, %s706_s28 }
  0x22   : > { %754 = vmatprep.subr.bf16.mxu1 %v865_v0  ;;  %s980_s11 = smov (!%p301_p11, %s299_s11), 3  ;;  %v562_v11 = vld [vmem:[%s315_s19] sm:$0xff]  ;;  %v563_v12 = vld [vmem:[%s315_s19 + $0x8] sm:$0xff] }
  0x23   : > { %s738_s12 = sshll.u32 %s980_s11, 5  ;;  %566 = vperm.xlu0 %808, %v562_v11  }
  0x24   : > { %s308_s15 = scalar_lea.vmem %s968_s3, %s738_s12 }
  0x25   : > { %755 = vmatpush3.bf16.msra.mxu1 %v810_v2  ;;  %v814_v6 = vld [vmem:[%s308_s15] sm:$0xff]   ;;  %v815_v7 = vld [vmem:[%s308_s15 + $0x8] sm:$0xff]   ;;  %v816_v8 = vld [vmem:[%s308_s15 + $0x10] sm:$0xff]  }
  0x26   : > { %760 = vmatprep.subr.bf16.mxu1 %v865_v0  ;;  %769 = vmatpush3.bf16.msra.mxu0 %v814_v6  ;;  %v817_v9 = vld [vmem:[%s308_s15 + $0x18] sm:$0xff]  }
  0x27   : > { %770 = vmatprep.subr.bf16.mxu0 %v865_v0  ;;  %571 = vperm.xlu0 %808, %v563_v12  }
  0x28   : > { %757 = vmatmul.mubr.msk.bf16.vlgmr.msra.gmra.mrb[0].mxu1 %vm328_vm0, %v811_v3 }
  0x29   : > { %761 = vmatpush3.bf16.msra.mxu1 %v812_v4  ;;  %764 = vmatprep.mubr.msk.bf16.mxu1 %vm866_vm1, %v865_v0 }
  0x2a   : > { %762 = vmatprep.subr.bf16.mxu1 %v865_v0  ;;  %771 = vmatpush3.bf16.msra.mxu0 %v815_v7 }
  0x2b   : > { %772 = vmatprep.subr.bf16.mxu0 %v865_v0 }
  0x2d   : > { %763 = vmatpush3.bf16.msra.mxu1 %v813_v5 }
  0x2e   : > { %773 = vmatpush3.bf16.msra.mxu0 %v816_v8 }
  0x2f   : > { %774 = vmatprep.subr.bf16.mxu0 %v865_v0 }
  0x30   : > { %765 = vmatmul.mubr.msk.bf16.vlgmr.msra.gmra.mrb[4].mxu1 %vm328_vm0, %v811_v3 }
  0x32   : > { %775 = vmatpush3.bf16.msra.mxu0 %v817_v9 }
  0xa2   : > { %v567_v42 = vpop.permute.xlu0 %566 }
  0xa6   : > { %v572_v45 = vpop.permute.xlu0 %571 }
  0xfb   : > { %v392_v13 = vpop.f32.mrb[0].mxu1 }
  0xfc   : > { %v726_v14 = vmul.f32 -1.442695, %v392_v13  ;;  %v758_v15 = vpop.f32.mrb[1].mxu1 }
  0xfd   : > { %v395_v16 = vpop.f32.mrb[2].mxu1 }
  0xfe   : > { %818 = vpow2.f32 %v726_v14  ;;  %v727_v17 = vmul.f32 -1.442695, %v395_v16  ;;  %v759_v18 = vpop.f32.mrb[3].mxu1 }
 0x100   : > { %820 = vpow2.f32 %v727_v17 }
 0x103   : > { %v450_v19 = vpop.f32.mrb[4].mxu1 }
 0x104   : > { %v766_v20 = vpop.f32.mrb[5].mxu1 }
 0x105   : > { %v453_v21 = vpop.f32.mrb[6].mxu1 }
 0x106   : > { %v767_v22 = vpop.f32.mrb[7].mxu1 }
 0x108   : > { %v819_v23 = vpop.eup %818 }
 0x109   : > { %v463_v24 = vadd.f32 1.0, %v819_v23 }
 0x10a   : > { %v821_v25 = vpop.eup %820 }
 0x10b   : > { %822 = vrcp.f32 %v463_v24  ;;  %v464_v26 = vadd.f32 1.0, %v821_v25 }
 0x10d   : > { %824 = vrcp.f32 %v464_v26 }
 0x115   : > { %v823_v27 = vpop.eup %822 }
 0x116   : > { %v469_v28 = vmul.f32 %v823_v27, %v392_v13 }
 0x117   : > { %v825_v29 = vpop.eup %824 }
 0x118   : > { %v470_v30 = vmul.f32 %v825_v29, %v395_v16  ;;  %v471_v31 = vmul.f32 %v469_v28, %v450_v19 }
 0x11a   : > { %v472_v32 = vmul.f32 %v470_v30, %v453_v21 }
 0x11c   : > { %v475_v33 = vpack.c.bf16 %v472_v32, %v471_v31 }
 0x11e   : > { %777 = vmatmul.mubr.msk.bf16.vlgmr.msra.gmra.mrb[0].mxu0 %vm508_vm2, %v475_v33 }
 0x1f1   : > { %v546_v35 = vpop.f32.mrb[0].mxu0 }
 0x1f2   : > { %v553_v37 = vadd.f32 %v546_v35, %v473_v34  ;;  %v778_v38 = vpop.f32.mrb[1].mxu0 }
 0x1f3   : > { %v549_v39 = vpop.f32.mrb[2].mxu0 }
 0x1f4   : > { %555 = vst.msk [vmem:[#allocation2] sm:$0xff] %vm328_vm0, %v553_v37  ;;  %v554_v40 = vadd.f32 %v549_v39, %v474_v36  ;;  %v779_v41 = vpop.f32.mrb[3].mxu0 }
 0x1f6   : > { %556 = vst.msk [vmem:[#allocation2 + $0x8] sm:$0xff] %vm328_vm0, %v554_v40 }
 0x1fb   : > { %v560_v43 = vld [vmem:[#allocation2] sm:$0xff] }
 0x1fc   : > { %v574_v44 = vmul.f32 %v567_v42, %v560_v43 }
 0x1fd   : > { %v561_v46 = vld [vmem:[#allocation2 + $0x8] sm:$0xff] }
 0x1fe   : > { %v739_v47 = vpack.c.bf16 %v574_v44, %v574_v44  ;;  %v575_v48 = vmul.f32 %v572_v45, %v561_v46 }
 0x200   : > { %585 = vst.msk [vmem:[%s321_s22] sm:$0xf] %vm584_vm3, %v739_v47  ;;  %v740_v49 = vpack.c.bf16 %v575_v48, %v575_v48 }
 0x202   : > { %586 = vst.msk [vmem:[%s321_s22 + $0x4] sm:$0xf] %vm584_vm3, %v740_v49 }
 0x203 PF: > { %s21_s25 = sadd.s32 1, %s862_s25   ;;  %s971_s23 = smov %s858_s24 }
 0x204   : > { %p18_p12 = scmp.ge.s32.totalorder %s21_s25, 8   ;;  %s972_s24 = smov %s974_s0 }
 0x206   :  { %20 = sbr.rel (!%p18_p12) target bundleno = 17 (0x11), region = 84 }

// kernel: _lambda_.19
= control target key start
LH: loop header
LB: loop body
LE: loop exit
PB: predicated region body
PF: predicated region fallthrough
CT: control target
= control target key end

     0   :  { %vm29_vm0 = vcmask 261120   ;;  %vm81_vm1 = vcmask 257024   ;;  %v59_v24 = vlaneseq  ;;  %s184_s0 = inlined_call_operand.vmem [shape: bf16[16,32], index: 0, kind: input, shape index: {}]   ;;  %s185_s1 = inlined_call_operand.vmem [shape: bf16[16,32], index: 1, kind: input, shape index: {}]   ;;  %s186_s5 = inlined_call_operand.vmem [shape: bf16[16,32], index: 5, kind: output, shape index: {1}]   ;;  %s187_s2 = inlined_call_operand.vmem [shape: bf16[1,32], index: 2, kind: input, shape index: {}]   ;;  %s188_s3 = inlined_call_operand.vmem [shape: bf16[1,32], index: 3, kind: input, shape index: {}]   ;;  %s189_s4 = inlined_call_operand.vmem [shape: bf16[16,32], index: 4, kind: output, shape index: {0}]  }
   0x1   :  { %v111_v0 = vld [vmem:[%s184_s0] sm:$0xff]  }
   0x2   :  { %v115_v1 = vld [vmem:[%s185_s1] sm:$0xff]   ;;  %v112_v2 = vunpack.c.l.bf16 %v111_v0  ;;  %v113_v4 = vunpack.c.h.bf16 %v111_v0  ;;  %v60_v28 = vshrl.u32 %v59_v24, 7 }
   0x3   :  { %v116_v3 = vunpack.c.l.bf16 %v115_v1  ;;  %v117_v5 = vunpack.c.h.bf16 %v115_v1  ;;  %v57_v29 = vld [vmem:[%s187_s2] sm:$0x1] }
   0x4   :  { %v65_v31 = vld [vmem:[%s188_s3] sm:$0x1]  ;;  %v58_v32 = vunpack.c.l.bf16 %v57_v29  ;;  %v61_v33 = vsub.s32 0, %v60_v28 }
   0x5   :  { %v27_v6 = vadd.f32 %v116_v3, %v112_v2  ;;  %v28_v7 = vadd.f32 %v117_v5, %v113_v4  ;;  %v66_v34 = vunpack.c.l.bf16 %v65_v31 }
   0x6   :  { %v62_v35 = vrot.slane %v58_v32, %v61_v33 }
   0x7   :  { %v30_v8 = vsel %vm29_vm0, %v27_v6, 0.0  ;;  %v108_v9 = vpack.c.bf16 %v27_v6, %v27_v6  ;;  %v109_v10 = vpack.c.bf16 %v28_v7, %v28_v7  ;;  %v33_v11 = vsel %vm29_vm0, %v28_v7, 0.0 }
   0x8   :  { %31 = vadd.xlane.f32.xlu0 %v30_v8  ;;  %v70_v37 = vrot.slane %v66_v34, %v61_v33 }
   0x9   :  { %92 = vst.msk [vmem:[%s186_s5] sm:$0xf] %vm81_vm1, %v108_v9  ;;  %93 = vst.msk [vmem:[%s186_s5 + $0x4] sm:$0xf] %vm81_vm1, %v109_v10 }
   0xc   :  { %34 = vadd.xlane.f32.xlu0 %v33_v11 }
  0x95   :  { %v32_v12 = vpop.xlane.xlu0 %31 }
  0x96   :  { %v37_v13 = vmul.f32 0.03125, %v32_v12 }
  0x98   :  { %v39_v14 = vsub.f32 %v27_v6, %v37_v13 }
  0x99   :  { %v35_v15 = vpop.xlane.xlu0 %34 }
  0x9a   :  { %v38_v16 = vmul.f32 0.03125, %v35_v15  ;;  %v41_v17 = vmul.f32 %v39_v14, %v39_v14 }
  0x9c   :  { %v40_v18 = vsub.f32 %v28_v7, %v38_v16  ;;  %v43_v19 = vsel %vm29_vm0, %v41_v17, 0.0 }
  0x9d   :  { %44 = vadd.xlane.f32.xlu1 %v43_v19 }
  0x9e   :  { %v42_v20 = vmul.f32 %v40_v18, %v40_v18 }
  0xa0   :  { %v46_v21 = vsel %vm29_vm0, %v42_v20, 0.0 }
  0xa1   :  { %47 = vadd.xlane.f32.xlu1 %v46_v21 }
 0x12a   :  { %v45_v22 = vpop.xlane.xlu1 %44 }
 0x12b   :  { %v49_v23 = vmul.f32 0.03125, %v45_v22 }
 0x12d   :  { %v51_v25 = vadd.f32 1e-05, %v49_v23 }
 0x12e   :  { %v48_v26 = vpop.xlane.xlu1 %47 }
 0x12f   :  { %118 = vrsqrt.f32 %v51_v25  ;;  %v50_v27 = vmul.f32 0.03125, %v48_v26 }
 0x131   :  { %v52_v30 = vadd.f32 1e-05, %v50_v27 }
 0x133   :  { %120 = vrsqrt.f32 %v52_v30 }
 0x139   :  { %v119_v36 = vpop.eup %118 }
 0x13a   :  { %v55_v38 = vmul.f32 %v119_v36, %v39_v14 }
 0x13c   :  { %v63_v39 = vmul.f32 %v62_v35, %v55_v38 }
 0x13d   :  { %v121_v40 = vpop.eup %120 }
 0x13e   :  { %v71_v41 = vadd.f32 %v70_v37, %v63_v39  ;;  %v56_v42 = vmul.f32 %v121_v40, %v40_v18 }
 0x140   :  { %v106_v43 = vpack.c.bf16 %v71_v41, %v71_v41  ;;  %v64_v44 = vmul.f32 %v62_v35, %v56_v42 }
 0x142   :  { %82 = vst.msk [vmem:[%s189_s4] sm:$0xf] %vm81_vm1, %v106_v43  ;;  %v72_v45 = vadd.f32 %v70_v37, %v64_v44 }
 0x144   :  { %v107_v46 = vpack.c.bf16 %v72_v45, %v72_v45 }
 0x146   :  { %83 = vst.msk [vmem:[%s189_s4 + $0x4] sm:$0xf] %vm81_vm1, %v107_v46 }

// kernel: _lambda_.25
= control target key start
LH: loop header
LB: loop body
LE: loop exit
PB: predicated region body
PF: predicated region fallthrough
CT: control target
= control target key end

     0   :  { %11 = vsyncpa [#allocation3], 0  ;;  %s284_s0 = inlined_call_operand.vmem [shape: bf16[16,32], index: 0, kind: input, shape index: {}]   ;;  %s285_s1 = inlined_call_operand.vmem [shape: bf16[16,32], index: 1, kind: input, shape index: {}]   ;;  %s286_s2 = inlined_call_operand.vmem [shape: bf16[1,32], index: 2, kind: input, shape index: {}]   ;;  %s287_s3 = inlined_call_operand.vmem [shape: bf16[1,32], index: 3, kind: input, shape index: {}]   ;;  %s288_s4 = inlined_call_operand.hbm [shape: bf16[16,32], index: 4, kind: output, shape index: {0}]   ;;  %s289_s5 = inlined_call_operand.hbm [shape: bf16[16,32], index: 5, kind: output, shape index: {1}]  }
   0x1   :  { %v137_v0 = vld [vmem:[%s284_s0] sm:$0xff]  }
   0x2   :  { %v141_v1 = vld [vmem:[%s285_s1] sm:$0xff]  }
   0x3   :  { %12 = vsyncpa [#allocation5], 0  ;;  %v138_v2 = vunpack.c.l.bf16 %v137_v0  ;;  %v142_v3 = vunpack.c.l.bf16 %v141_v1  ;;  %v139_v4 = vunpack.c.h.bf16 %v137_v0  ;;  %v143_v5 = vunpack.c.h.bf16 %v141_v1  ;;  %s200_s0 = smov [#allocation4]  }
   0x4   :  { %vm31_vm0 = vcmask 261120   ;;  %vm83_vm1 = vcmask 257024   ;;  %s113_s1 = sshll.u32 %s200_s0, 4  ;;  %s114_s1 = int_to_ptr.vmem [resolvable:$true] %s113_s1 }
   0x5   :  { %v29_v6 = vadd.f32 %v142_v3, %v138_v2  ;;  %v30_v7 = vadd.f32 %v143_v5, %v139_v4  ;;  %s152_s22 = scalar_lea.vmem %s114_s1, 128  ;;  %p157_p1 = scmp.lt.s32.totalorder %s114_s1, %s114_s1 }
   0x6   :  { %p153_p0 = scmp.ne.s32.totalorder %s114_s1, %s152_s22  ;;  %p158_p2 = scmp.lt.s32.totalorder %s152_s22, %s152_s22 }
   0x7   :  { %v32_v8 = vsel %vm31_vm0, %v29_v6, 0.0  ;;  %v35_v9 = vsel %vm31_vm0, %v30_v7, 0.0  ;;  %v134_v20 = vpack.c.bf16 %v29_v6, %v29_v6  ;;  %v135_v21 = vpack.c.bf16 %v30_v7, %v30_v7 }
   0x8   :  { %33 = vadd.xlane.f32.xlu0 %v32_v8  ;;  %p159_p3 = por %p158_p2, %p157_p1 }
   0x9   :  { %94 = vst.msk [vmem:[#allocation4] sm:$0xf] %vm83_vm1, %v134_v20  ;;  %95 = vst.msk [vmem:[#allocation4 + $0x4] sm:$0xf] %vm83_vm1, %v135_v21 }
   0xa   :  { %p160_p4 = pnand %p159_p3, %p153_p0 }
   0xc   :  { %36 = vadd.xlane.f32.xlu0 %v35_v9 }
  0x95   :  { %v34_v10 = vpop.xlane.xlu0 %33 }
  0x96   :  { %v39_v11 = vmul.f32 0.03125, %v34_v10 }
  0x98   :  { %v41_v12 = vsub.f32 %v29_v6, %v39_v11 }
  0x99   :  { %v37_v13 = vpop.xlane.xlu0 %36 }
  0x9a   :  { %v40_v14 = vmul.f32 0.03125, %v37_v13  ;;  %v43_v15 = vmul.f32 %v41_v12, %v41_v12 }
  0x9c   :  { %v42_v16 = vsub.f32 %v30_v7, %v40_v14  ;;  %v45_v17 = vsel %vm31_vm0, %v43_v15, 0.0 }
  0x9d   :  { %46 = vadd.xlane.f32.xlu1 %v45_v17 }
  0x9e   :  { %v44_v18 = vmul.f32 %v42_v16, %v42_v16 }
  0xa0   :  { %v48_v19 = vsel %vm31_vm0, %v44_v18, 0.0 }
  0xa1   :  { %49 = vadd.xlane.f32.xlu1 %v48_v19 }
  0xa2   :  { %163 = shalt.err (!%p160_p4)
}
  0xa3   :  { %s164_s25 = scalar_lea.hbm %s289_s5, 128 }
  0xa4   :  { %p165_p5 = scmp.ne.s32.totalorder %s289_s5, %s164_s25  ;;  %p168_p6 = scmp.lt.u32.totalorder %s164_s25, %s289_s5 }
  0xa6   :  { %p170_p7 = pnand %p168_p6, %p165_p5 }
  0xa8   :  { %173 = shalt.err (!%p170_p7)
}
  0xa9   :  { %s201_s30 = smov 64   ;;  %s202_s6 = smov 4   ;;  %v61_v24 = vlaneseq  ;;  %v59_v30 = vld [vmem:[%s286_s2] sm:$0x1] }
  0xaa   :  { %119 = dma.vmem_to_hbm [thread:$0]  %s114_s1, 128, %s289_s5, [#allocation5], %s201_s30, %s201_s30, %s202_s6   ;;  %v60_v32 = vunpack.c.l.bf16 %v59_v30 }
  0xab   :  { %v62_v28 = vshrl.u32 %v61_v24, 7  ;;  %v67_v31 = vld [vmem:[%s287_s3] sm:$0x1]  ;;  %s203_s5 = smov [#allocation2]  }
  0xac   :  { %v68_v34 = vunpack.c.l.bf16 %v67_v31  ;;  %s101_s2 = sshll.u32 %s203_s5, 4  ;;  %s102_s2 = int_to_ptr.vmem [resolvable:$true] %s101_s2 }
  0xad   :  { %v63_v33 = vsub.s32 0, %v62_v28  ;;  %s174_s3 = scalar_lea.vmem %s102_s2, 128  ;;  %p179_p9 = scmp.lt.s32.totalorder %s102_s2, %s102_s2 }
  0xae   :  { %p175_p8 = scmp.ne.s32.totalorder %s102_s2, %s174_s3  ;;  %p180_p10 = scmp.lt.s32.totalorder %s174_s3, %s174_s3 }
  0xaf   :  { %v64_v35 = vrot.slane %v60_v32, %v63_v33  ;;  %v72_v38 = vrot.slane %v68_v34, %v63_v33 }
  0xb0   :  { %p181_p11 = por %p180_p10, %p179_p9 }
  0xb2   :  { %p182_p12 = pnand %p181_p11, %p175_p8 }
 0x12a   :  { %v47_v22 = vpop.xlane.xlu1 %46 }
 0x12b   :  { %v51_v23 = vmul.f32 0.03125, %v47_v22 }
 0x12d   :  { %v53_v25 = vadd.f32 1e-05, %v51_v23 }
 0x12e   :  { %v50_v26 = vpop.xlane.xlu1 %49 }
 0x12f   :  { %148 = vrsqrt.f32 %v53_v25  ;;  %v52_v27 = vmul.f32 0.03125, %v50_v26 }
 0x131   :  { %v54_v29 = vadd.f32 1e-05, %v52_v27 }
 0x133   :  { %150 = vrsqrt.f32 %v54_v29 }
 0x139   :  { %v149_v36 = vpop.eup %148 }
 0x13a   :  { %v57_v37 = vmul.f32 %v149_v36, %v41_v12 }
 0x13c   :  { %v65_v39 = vmul.f32 %v64_v35, %v57_v37 }
 0x13d   :  { %v151_v40 = vpop.eup %150 }
 0x13e   :  { %v58_v41 = vmul.f32 %v151_v40, %v42_v16  ;;  %v73_v42 = vadd.f32 %v72_v38, %v65_v39 }
 0x140   :  { %v66_v43 = vmul.f32 %v64_v35, %v58_v41  ;;  %v132_v44 = vpack.c.bf16 %v73_v42, %v73_v42 }
 0x142   :  { %v74_v45 = vadd.f32 %v72_v38, %v66_v43  ;;  %84 = vst.msk [vmem:[#allocation2] sm:$0xf] %vm83_vm1, %v132_v44 }
 0x144   :  { %v133_v46 = vpack.c.bf16 %v74_v45, %v74_v45 }
 0x146   :  { %85 = vst.msk [vmem:[#allocation2 + $0x4] sm:$0xf] %vm83_vm1, %v133_v46 }
 0x147   :  { %185 = shalt.err (!%p182_p12)
}
 0x148   :  { %s186_s15 = scalar_lea.hbm %s288_s4, 128 }
 0x149   :  { %p187_p13 = scmp.ne.s32.totalorder %s288_s4, %s186_s15  ;;  %p190_p0 = scmp.lt.u32.totalorder %s186_s15, %s288_s4 }
 0x14b   :  { %p192_p1 = pnand %p190_p0, %p187_p13 }
 0x14d   :  { %195 = shalt.err (!%p192_p1)
}
 0x14e   :  { %107 = dma.vmem_to_hbm [thread:$0]  %s102_s2, 128, %s288_s4, [#allocation3], %s201_s30, %s201_s30, %s202_s6  }
 0x14f   :  { %196 = dma.done.wait [#allocation3], 128  }
 0x150   :  { %197 = vsyncadd [#allocation3], 4294967168 }
 0x151   :  { %198 = dma.done.wait [#allocation5], 128  }
 0x152   :  { %199 = vsyncadd [#allocation5], 4294967168 }
 0x153   :  { %126 = vsyncpa [#allocation3], 1 }
 0x154   :  { %127 = vsyncpa [#allocation5], 1 }

</bundles_post_ra>
